<compile_context>
chip_gen: v5e
topology: v5e:2x2
jax: 0.10.0
libtpu: 0.0.40
codegen_flags: <defaults>
</compile_context>

<pallas_src>
import jax
import jax.numpy as jnp
from jax.experimental import pallas as pl
from jax.experimental.pallas import tpu as pltpu

# ----------------------------- model config ---------------------------------
B = 2            # batch
T = 16           # sequence length (time)
INPUT_SIZE = 8   # per-step feature size
HIDDEN = 32      # LSTM hidden size
NUM_LAYERS = 2   # LSTM layers (kernel below is written for exactly 2)
NUM_CLASSES = 4
BN_EPS = 1e-5
C1, C2 = 64, 128         # conv channel widths
LANES = 128              # slab width / lane-dense output width
S = T // 4               # sequence length seen by the LSTM after the two pools

assert T % 4 == 0, "kernel hard-codes two MaxPool(2,2) stages"
assert NUM_LAYERS == 2, "kernel hard-codes the 2-layer LSTM wavefront"
assert 4 * HIDDEN <= LANES and C2 <= LANES and INPUT_SIZE * 3 <= LANES


# ----------------------- packed parameter slab layout ------------------------
def _ceil8(n):
    return -(-n // 8) * 8


_SLAB_SPECS = [
    # name, rows, cols   (rows padded to a multiple of 8 so every block is 8-aligned)
    ("c1w", 3 * INPUT_SIZE, C1), ("c1b", 1, C1),
    ("c2w", 3 * C1, C2),         ("c2b", 1, C2),
    ("wih0", C2, 4 * HIDDEN), ("whh0", HIDDEN, 4 * HIDDEN), ("lb0", 1, 4 * HIDDEN),
    ("wih1", HIDDEN, 4 * HIDDEN), ("whh1", HIDDEN, 4 * HIDDEN), ("lb1", 1, 4 * HIDDEN),
    ("f1w", HIDDEN, 128), ("f1b", 1, 128),
    ("f2w", 128, NUM_CLASSES), ("f2b", 1, NUM_CLASSES),
]


def _build_layout():
    layout, off = {}, 0
    for name, r, c in _SLAB_SPECS:
        layout[name] = (off, r, c)
        off += _ceil8(r)
    return layout, off


_LAYOUT, _SLAB_ROWS = _build_layout()


def _slab(ref, name, full_width=False):
    """Static (free) slice of the packed weight slab ref."""
    off, r, c = _LAYOUT[name]
    return ref[off:off + r, 0:(LANES if full_width else c)]


# ========================== in-kernel building blocks =========================
def _conv_bn_relu_pool(x, xp_ref, w_ref, wname, bname):
    """Conv1d(k=3, pad=1) with BN folded into the weights + ReLU + MaxPool(2,2).

    x:      (B, t, Cin)    channels-last activation (value)
    xp_ref: (B, t+2, Cin)  VMEM scratch holding the zero-padded activation
    returns (B, t//2, Cout)
    """
    bsz, t, cin = x.shape
    woff, _, cout = _LAYOUT[wname]
    boff = _LAYOUT[bname][0]
    bias = w_ref[boff:boff + 1, 0:cout]                               # (1, Cout)

    # Zero-padded activation via scratch store (no relayout concat).
    xp_ref[...] = jnp.zeros(xp_ref.shape, xp_ref.dtype)
    xp_ref[:, 1:t + 1, :] = x

    # Tap-sum conv: three small accumulating MXU pushes instead of a lane-axis
    # im2col concat (which forced XLU lane relayouts at Cin = 8 / 64).
    acc = jnp.zeros((bsz * t, cout), jnp.float32)
    for k in range(3):
        tap = xp_ref[:, k:k + t, :].reshape(bsz * t, cin)
        wk = w_ref[woff + k * cin:woff + (k + 1) * cin, 0:cout]       # (Cin, Cout)
        acc = acc + jnp.dot(tap, wk, preferred_element_type=jnp.float32)

    y = jnp.maximum(acc + bias, 0.0)                                  # folded BN + ReLU
    # MaxPool1d(kernel=2, stride=2): reshape-and-reduce.
    return jnp.max(y.reshape(bsz, t // 2, 2, cout), axis=2)


def _lstm_cell(gates, c):
    """One LSTM cell update. gates: (B, 4H) pre-activation [i,f,g,o]; c: (B, H)."""
    sg = jax.nn.sigmoid(gates)                       # one wide EUP push (i, f, o)
    g = jnp.tanh(gates[:, 2 * HIDDEN:3 * HIDDEN])
    c_new = sg[:, HIDDEN:2 * HIDDEN] * c + sg[:, 0:HIDDEN] * g
    h_new = sg[:, 3 * HIDDEN:4 * HIDDEN] * jnp.tanh(c_new)
    return c_new, h_new


# =============================== fused kernel =================================
def fused_forward_kernel(x_ref, w_ref, o_ref, xp1_ref, xp2_ref):
    f32 = jnp.float32
    x = x_ref[...].astype(f32)                                        # (B, T, Cin)

    y = _conv_bn_relu_pool(x, xp1_ref, w_ref, "c1w", "c1b")           # (B, T/2, 64)
    y = _conv_bn_relu_pool(y, xp2_ref, w_ref, "c2w", "c2b")           # (B, T/4, 128)

    # ------------------ 2-layer LSTM, wavefront-interleaved -------------------
    bsz, seq, _ = y.shape                                             # seq == S
    wih0, whh0, lb0 = _slab(w_ref, "wih0"), _slab(w_ref, "whh0"), _slab(w_ref, "lb0")
    wih1, whh1, lb1 = _slab(w_ref, "wih1"), _slab(w_ref, "whh1"), _slab(w_ref, "lb1")

    # Layer-1 input projection hoisted out of the recurrence: one (B*S, 128) matmul.
    xproj = (jnp.dot(y.reshape(bsz * seq, C2), wih0,
                     preferred_element_type=f32) + lb0).reshape(bsz, seq, 4 * HIDDEN)

    h1 = jnp.zeros((bsz, HIDDEN), f32); c1 = jnp.zeros((bsz, HIDDEN), f32)
    h2 = jnp.zeros((bsz, HIDDEN), f32); c2 = jnp.zeros((bsz, HIDDEN), f32)

    # S+1 = 5 waves instead of 2*S = 8 serial steps: at wave wv, layer 1 runs its
    # step wv while layer 2 runs its step wv-1 (consuming h1_{wv-1} = h1_prev).
    for wv in range(seq + 1):       # static unroll (S = 4)
        h1_prev = h1
        if wv < seq:                # layer-1 step wv
            g = xproj[:, wv, :] + jnp.dot(h1_prev, whh0, preferred_element_type=f32)
            c1, h1 = _lstm_cell(g, c1)
        if wv >= 1:                 # layer-2 step wv-1
            g = (jnp.dot(h1_prev, wih1, preferred_element_type=f32)
                 + jnp.dot(h2, whh1, preferred_element_type=f32) + lb1)
            c2, h2 = _lstm_cell(g, c2)

    # TODO(synk): Dropout(0.5) is inference-mode identity (no stochastic mask).
    z = jnp.maximum(jnp.dot(h2, _slab(w_ref, "f1w"), preferred_element_type=f32)
                    + _slab(w_ref, "f1b"), 0.0)
    # Lane-dense (B, 128) output; classes live in lanes 0..NUM_CLASSES-1.
    o_ref[...] = (jnp.dot(z, _slab(w_ref, "f2w", full_width=True),
                          preferred_element_type=f32)
                  + _slab(w_ref, "f2b", full_width=True))


# ============================= host-side prep ================================
_VMEM = pl.BlockSpec(memory_space=pltpu.MemorySpace.VMEM)


def _fold_conv_bn(w, conv_b, bn):
    """Fold BN (inference stats) into the im2col conv weight / bias.

    w: (3, Cin, Cout) tap-major conv weight -> (3*Cin, Cout); bias -> (1, Cout).
    """
    scale = bn["gamma"] / jnp.sqrt(bn["var"] + BN_EPS)                # (Cout,)
    w_folded = (w * scale).reshape(w.shape[0] * w.shape[1], w.shape[2])
    b_folded = bn["beta"] + (conv_b - bn["mean"]) * scale
    return w_folded, b_folded.reshape(1, -1)


def pack_params(p):
    """One-time host prep: fold BN, pad every weight to 128 lanes / 8-aligned rows
    and pack everything into a single contiguous f32 slab (one DMA at kernel entry)."""
    c1w, c1b = _fold_conv_bn(p["conv1_w"], p["conv1_b"], p["bn1"])
    c2w, c2b = _fold_conv_bn(p["conv2_w"], p["conv2_b"], p["bn2"])
    l0, l1 = p["lstm"]
    tensors = {
        "c1w": c1w, "c1b": c1b, "c2w": c2w, "c2b": c2b,
        "wih0": l0["w_ih"], "whh0": l0["w_hh"], "lb0": l0["b"].reshape(1, -1),
        "wih1": l1["w_ih"], "whh1": l1["w_hh"], "lb1": l1["b"].reshape(1, -1),
        "f1w": p["fc1_w"], "f1b": p["fc1_b"].reshape(1, -1),
        "f2w": p["fc2_w"], "f2b": p["fc2_b"].reshape(1, -1),
    }
    slab = jnp.zeros((_SLAB_ROWS, LANES), jnp.float32)
    for name, (off, r, c) in _LAYOUT.items():
        t = jnp.asarray(tensors[name], jnp.float32)
        assert t.shape == (r, c), (name, t.shape, (r, c))
        slab = slab.at[off:off + r, 0:c].set(t)
    return jax.device_put(slab)


@jax.jit
def forward(x, slab):
    """x: (B, T, INPUT_SIZE) channels-last (PyTorch's permute(0,2,1) is unnecessary)."""
    assert x.shape == (B, T, INPUT_SIZE)
    out = pl.pallas_call(
        fused_forward_kernel,
        out_shape=jax.ShapeDtypeStruct((B, LANES), jnp.float32),
        in_specs=[_VMEM, _VMEM],
        out_specs=_VMEM,
        scratch_shapes=[
            pltpu.VMEM((B, T + 2, INPUT_SIZE), jnp.float32),   # padded conv1 input
            pltpu.VMEM((B, T // 2 + 2, C1), jnp.float32),      # padded conv2 input
        ],
    )(x, slab)
    return out[:, :NUM_CLASSES]


# =============================== parameters ===================================
def init_params(key):
    ks = jax.random.split(key, 32)
    k = iter(ks)
    p = {}
    # conv1: PyTorch weight (64, INPUT_SIZE, 3) stored here as (3, INPUT_SIZE, 64)
    p["conv1_w"] = 0.1 * jax.random.normal(next(k), (3, INPUT_SIZE, C1), jnp.float32)
    p["conv1_b"] = 0.1 * jax.random.normal(next(k), (C1,), jnp.float32)
    p["bn1"] = dict(
        gamma=1.0 + 0.1 * jax.random.normal(next(k), (C1,), jnp.float32),
        beta=0.1 * jax.random.normal(next(k), (C1,), jnp.float32),
        mean=0.1 * jax.random.normal(next(k), (C1,), jnp.float32),
        var=0.5 + jnp.abs(jax.random.normal(next(k), (C1,), jnp.float32)),
    )
    p["conv2_w"] = 0.1 * jax.random.normal(next(k), (3, C1, C2), jnp.float32)
    p["conv2_b"] = 0.1 * jax.random.normal(next(k), (C2,), jnp.float32)
    p["bn2"] = dict(
        gamma=1.0 + 0.1 * jax.random.normal(next(k), (C2,), jnp.float32),
        beta=0.1 * jax.random.normal(next(k), (C2,), jnp.float32),
        mean=0.1 * jax.random.normal(next(k), (C2,), jnp.float32),
        var=0.5 + jnp.abs(jax.random.normal(next(k), (C2,), jnp.float32)),
    )
    # LSTM stack (PyTorch (4H, Din)/(4H, H) weights stored transposed, gate order i,f,g,o)
    p["lstm"] = []
    din = C2
    for _ in range(NUM_LAYERS):
        w_ih = 0.1 * jax.random.normal(next(k), (din, 4 * HIDDEN), jnp.float32)
        w_hh = 0.1 * jax.random.normal(next(k), (HIDDEN, 4 * HIDDEN), jnp.float32)
        b_ih = 0.1 * jax.random.normal(next(k), (4 * HIDDEN,), jnp.float32)
        b_hh = 0.1 * jax.random.normal(next(k), (4 * HIDDEN,), jnp.float32)
        p["lstm"].append(dict(w_ih=w_ih, w_hh=w_hh, b=b_ih + b_hh))
        din = HIDDEN
    p["fc1_w"] = 0.1 * jax.random.normal(next(k), (HIDDEN, 128), jnp.float32)
    p["fc1_b"] = 0.1 * jax.random.normal(next(k), (128,), jnp.float32)
    p["fc2_w"] = 0.1 * jax.random.normal(next(k), (128, NUM_CLASSES), jnp.float32)
    p["fc2_b"] = 0.1 * jax.random.normal(next(k), (NUM_CLASSES,), jnp.float32)
    return p


# ============================ pure-JAX reference ==============================
def reference_forward(x, p):
    hi = jax.lax.Precision.HIGHEST

    def conv_bn_relu_pool(xc, w, b, bn):
        bsz, t, _ = xc.shape
        xp = jnp.pad(xc, ((0, 0), (1, 1), (0, 0)))
        taps = jnp.stack([xp[:, k:k + t, :] for k in range(3)], axis=2)  # (B,T,3,Cin)
        y = jnp.einsum("btkc,kcd->btd", taps, w, precision=hi) + b
        y = (y - bn["mean"]) / jnp.sqrt(bn["var"] + BN_EPS) * bn["gamma"] + bn["beta"]
        y = jnp.maximum(y, 0.0)
        return y.reshape(bsz, t // 2, 2, -1).max(axis=2)

    def lstm_ref(xs, w_ih, w_hh, bias):
        bsz, seq, _ = xs.shape
        hid = w_hh.shape[0]
        h = jnp.zeros((bsz, hid)); c = jnp.zeros((bsz, hid))
        hs = []
        for t in range(seq):
            g = (jnp.dot(xs[:, t, :], w_ih, precision=hi)
                 + jnp.dot(h, w_hh, precision=hi) + bias)
            i = jax.nn.sigmoid(g[:, :hid]); f = jax.nn.sigmoid(g[:, hid:2 * hid])
            gg = jnp.tanh(g[:, 2 * hid:3 * hid]); o = jax.nn.sigmoid(g[:, 3 * hid:])
            c = f * c + i * gg
            h = o * jnp.tanh(c)
            hs.append(h)
        return jnp.stack(hs, axis=1)

    y = conv_bn_relu_pool(x, p["conv1_w"], p["conv1_b"], p["bn1"])
    y = conv_bn_relu_pool(y, p["conv2_w"], p["conv2_b"], p["bn2"])
    feat = y
    for lp in p["lstm"]:
        feat = lstm_ref(feat, lp["w_ih"], lp["w_hh"], lp["b"])
    h_last = feat[:, -1, :]
    z = jnp.maximum(jnp.dot(h_last, p["fc1_w"], precision=hi) + p["fc1_b"], 0.0)
    return jnp.dot(z, p["fc2_w"], precision=hi) + p["fc2_b"]


# ================================== main ======================================
if __name__ == "__main__":
    root = jax.random.PRNGKey(0)
    kx, kp = jax.random.split(root)
    x = jax.random.normal(kx, (B, T, INPUT_SIZE), jnp.float32)
    params = init_params(kp)
    slab = pack_params(params)          # one-time host prep (BN folding + packing)

    out = jax.block_until_ready(forward(x, slab))
    assert out.shape == (B, NUM_CLASSES), out.shape

    ref = reference_forward(x, params)
    assert jnp.all(jnp.isfinite(out))
    assert jnp.allclose(out, ref, atol=3e-2, rtol=3e-2), (out, ref)

    print("KERNEL_OK")
</pallas_src>

<mosaic_0001>
module attributes {stable_mosaic.version = 11 : i64} {
  func.func @fused_forward_kernel(%arg0: memref<2x16x8xf32, #tpu.memory_space<vmem>>, %arg1: memref<648x128xf32, #tpu.memory_space<vmem>>, %arg2: memref<2x128xf32, #tpu.memory_space<vmem>>, %arg3: memref<2x18x8xf32, #tpu.memory_space<vmem>>, %arg4: memref<2x10x64xf32, #tpu.memory_space<vmem>>) attributes {dimension_semantics = [], scalar_prefetch = 0 : i64, scratch_operands = 2 : i64, tpu.core_type = #tpu.core_type<tc>} {
    %c0 = arith.constant 0 : index
    %c0_0 = arith.constant 0 : index
    %c0_1 = arith.constant 0 : index
    %0 = vector.load %arg0[%c0, %c0_0, %c0_1] : memref<2x16x8xf32, #tpu.memory_space<vmem>>, vector<2x16x8xf32>
    %c24 = arith.constant 24 : index
    %c0_2 = arith.constant 0 : index
    %1 = vector.load %arg1[%c24, %c0_2] : memref<648x128xf32, #tpu.memory_space<vmem>>, vector<1x64xf32>
    %cst = arith.constant 0.000000e+00 : f32
    %2 = vector.broadcast %cst : f32 to vector<2x18x8xf32>
    %c0_3 = arith.constant 0 : index
    %c0_4 = arith.constant 0 : index
    %c0_5 = arith.constant 0 : index
    %3 = vector.load %arg3[%c0_3, %c0_4, %c0_5] : memref<2x18x8xf32, #tpu.memory_space<vmem>>, vector<2x18x8xf32>
    tpu.vector_store %arg3[%c0_3, %c0_4, %c0_5], %2 {strides = array<i32>} : memref<2x18x8xf32, #tpu.memory_space<vmem>>, vector<2x18x8xf32>,
    %c0_6 = arith.constant 0 : index
    %c1 = arith.constant 1 : index
    %c0_7 = arith.constant 0 : index
    %4 = vector.load %arg3[%c0_6, %c1, %c0_7] : memref<2x18x8xf32, #tpu.memory_space<vmem>>, vector<2x16x8xf32>
    tpu.vector_store %arg3[%c0_6, %c1, %c0_7], %0 {strides = array<i32>} : memref<2x18x8xf32, #tpu.memory_space<vmem>>, vector<2x16x8xf32>,
    %cst_8 = arith.constant 0.000000e+00 : f32
    %5 = vector.broadcast %cst_8 : f32 to vector<32x64xf32>
    %c0_9 = arith.constant 0 : index
    %c0_10 = arith.constant 0 : index
    %c0_11 = arith.constant 0 : index
    %6 = vector.load %arg3[%c0_9, %c0_10, %c0_11] : memref<2x18x8xf32, #tpu.memory_space<vmem>>, vector<2x16x8xf32>
    %7 = vector.shape_cast %6 : vector<2x16x8xf32> to vector<32x8xf32>
    %c0_12 = arith.constant 0 : index
    %c0_13 = arith.constant 0 : index
    %8 = vector.load %arg1[%c0_12, %c0_13] : memref<648x128xf32, #tpu.memory_space<vmem>>, vector<8x64xf32>
    %cst_14 = arith.constant dense<0.000000e+00> : vector<32x64xf32>
    %9 = tpu.matmul %7, %8, %cst_14 {dimension_numbers = #tpu.dot_dimension_numbers<[1], [0], [0], [1], [0, 0, 1, 1], [], []>} : vector<32x8xf32>, vector<8x64xf32>, vector<32x64xf32> -> vector<32x64xf32>
    %10 = arith.addf %5, %9 : vector<32x64xf32>
    %c0_15 = arith.constant 0 : index
    %c1_16 = arith.constant 1 : index
    %c0_17 = arith.constant 0 : index
    %11 = vector.load %arg3[%c0_15, %c1_16, %c0_17] : memref<2x18x8xf32, #tpu.memory_space<vmem>>, vector<2x16x8xf32>
    %12 = vector.shape_cast %11 : vector<2x16x8xf32> to vector<32x8xf32>
    %c8 = arith.constant 8 : index
    %c0_18 = arith.constant 0 : index
    %13 = vector.load %arg1[%c8, %c0_18] : memref<648x128xf32, #tpu.memory_space<vmem>>, vector<8x64xf32>
    %cst_19 = arith.constant dense<0.000000e+00> : vector<32x64xf32>
    %14 = tpu.matmul %12, %13, %cst_19 {dimension_numbers = #tpu.dot_dimension_numbers<[1], [0], [0], [1], [0, 0, 1, 1], [], []>} : vector<32x8xf32>, vector<8x64xf32>, vector<32x64xf32> -> vector<32x64xf32>
    %15 = arith.addf %10, %14 : vector<32x64xf32>
    %c0_20 = arith.constant 0 : index
    %c2 = arith.constant 2 : index
    %c0_21 = arith.constant 0 : index
    %16 = vector.load %arg3[%c0_20, %c2, %c0_21] : memref<2x18x8xf32, #tpu.memory_space<vmem>>, vector<2x16x8xf32>
    %17 = vector.shape_cast %16 : vector<2x16x8xf32> to vector<32x8xf32>
    %c16 = arith.constant 16 : index
    %c0_22 = arith.constant 0 : index
    %18 = vector.load %arg1[%c16, %c0_22] : memref<648x128xf32, #tpu.memory_space<vmem>>, vector<8x64xf32>
    %cst_23 = arith.constant dense<0.000000e+00> : vector<32x64xf32>
    %19 = tpu.matmul %17, %18, %cst_23 {dimension_numbers = #tpu.dot_dimension_numbers<[1], [0], [0], [1], [0, 0, 1, 1], [], []>} : vector<32x8xf32>, vector<8x64xf32>, vector<32x64xf32> -> vector<32x64xf32>
    %20 = arith.addf %15, %19 : vector<32x64xf32>
    %21 = vector.broadcast %1 : vector<1x64xf32> to vector<32x64xf32>
    %22 = arith.addf %20, %21 : vector<32x64xf32>
    %cst_24 = arith.constant 0.000000e+00 : f32
    %23 = vector.broadcast %cst_24 : f32 to vector<32x64xf32>
    %24 = arith.maximumf %22, %23 : vector<32x64xf32>
    %25 = vector.shape_cast %24 : vector<32x64xf32> to vector<2x8x2x64xf32>
    %cst_25 = arith.constant dense<0xFF800000> : vector<2x8x64xf32>
    %26 = vector.multi_reduction <maximumf>, %25, %cst_25 [2] : vector<2x8x2x64xf32> to vector<2x8x64xf32>
    %c224 = arith.constant 224 : index
    %c0_26 = arith.constant 0 : index
    %27 = vector.load %arg1[%c224, %c0_26] : memref<648x128xf32, #tpu.memory_space<vmem>>, vector<1x128xf32>
    %cst_27 = arith.constant 0.000000e+00 : f32
    %28 = vector.broadcast %cst_27 : f32 to vector<2x10x64xf32>
    %c0_28 = arith.constant 0 : index
    %c0_29 = arith.constant 0 : index
    %c0_30 = arith.constant 0 : index
    %29 = vector.load %arg4[%c0_28, %c0_29, %c0_30] : memref<2x10x64xf32, #tpu.memory_space<vmem>>, vector<2x10x64xf32>
    tpu.vector_store %arg4[%c0_28, %c0_29, %c0_30], %28 {strides = array<i32>} : memref<2x10x64xf32, #tpu.memory_space<vmem>>, vector<2x10x64xf32>,
    %c0_31 = arith.constant 0 : index
    %c1_32 = arith.constant 1 : index
    %c0_33 = arith.constant 0 : index
    %30 = vector.load %arg4[%c0_31, %c1_32, %c0_33] : memref<2x10x64xf32, #tpu.memory_space<vmem>>, vector<2x8x64xf32>
    tpu.vector_store %arg4[%c0_31, %c1_32, %c0_33], %26 {strides = array<i32>} : memref<2x10x64xf32, #tpu.memory_space<vmem>>, vector<2x8x64xf32>,
    %cst_34 = arith.constant 0.000000e+00 : f32
    %31 = vector.broadcast %cst_34 : f32 to vector<16x128xf32>
    %c0_35 = arith.constant 0 : index
    %c0_36 = arith.constant 0 : index
    %c0_37 = arith.constant 0 : index
    %32 = vector.load %arg4[%c0_35, %c0_36, %c0_37] : memref<2x10x64xf32, #tpu.memory_space<vmem>>, vector<2x8x64xf32>
    %33 = vector.shape_cast %32 : vector<2x8x64xf32> to vector<16x64xf32>
    %c32 = arith.constant 32 : index
    %c0_38 = arith.constant 0 : index
    %34 = vector.load %arg1[%c32, %c0_38] : memref<648x128xf32, #tpu.memory_space<vmem>>, vector<64x128xf32>
    %cst_39 = arith.constant dense<0.000000e+00> : vector<16x128xf32>
    %35 = tpu.matmul %33, %34, %cst_39 {dimension_numbers = #tpu.dot_dimension_numbers<[1], [0], [0], [1], [0, 0, 1, 1], [], []>} : vector<16x64xf32>, vector<64x128xf32>, vector<16x128xf32> -> vector<16x128xf32>
    %36 = arith.addf %31, %35 : vector<16x128xf32>
    %c0_40 = arith.constant 0 : index
    %c1_41 = arith.constant 1 : index
    %c0_42 = arith.constant 0 : index
    %37 = vector.load %arg4[%c0_40, %c1_41, %c0_42] : memref<2x10x64xf32, #tpu.memory_space<vmem>>, vector<2x8x64xf32>
    %38 = vector.shape_cast %37 : vector<2x8x64xf32> to vector<16x64xf32>
    %c96 = arith.constant 96 : index
    %c0_43 = arith.constant 0 : index
    %39 = vector.load %arg1[%c96, %c0_43] : memref<648x128xf32, #tpu.memory_space<vmem>>, vector<64x128xf32>
    %cst_44 = arith.constant dense<0.000000e+00> : vector<16x128xf32>
    %40 = tpu.matmul %38, %39, %cst_44 {dimension_numbers = #tpu.dot_dimension_numbers<[1], [0], [0], [1], [0, 0, 1, 1], [], []>} : vector<16x64xf32>, vector<64x128xf32>, vector<16x128xf32> -> vector<16x128xf32>
    %41 = arith.addf %36, %40 : vector<16x128xf32>
    %c0_45 = arith.constant 0 : index
    %c2_46 = arith.constant 2 : index
    %c0_47 = arith.constant 0 : index
    %42 = vector.load %arg4[%c0_45, %c2_46, %c0_47] : memref<2x10x64xf32, #tpu.memory_space<vmem>>, vector<2x8x64xf32>
    %43 = vector.shape_cast %42 : vector<2x8x64xf32> to vector<16x64xf32>
    %c160 = arith.constant 160 : index
    %c0_48 = arith.constant 0 : index
    %44 = vector.load %arg1[%c160, %c0_48] : memref<648x128xf32, #tpu.memory_space<vmem>>, vector<64x128xf32>
    %cst_49 = arith.constant dense<0.000000e+00> : vector<16x128xf32>
    %45 = tpu.matmul %43, %44, %cst_49 {dimension_numbers = #tpu.dot_dimension_numbers<[1], [0], [0], [1], [0, 0, 1, 1], [], []>} : vector<16x64xf32>, vector<64x128xf32>, vector<16x128xf32> -> vector<16x128xf32>
    %46 = arith.addf %41, %45 : vector<16x128xf32>
    %47 = vector.broadcast %27 : vector<1x128xf32> to vector<16x128xf32>
    %48 = arith.addf %46, %47 : vector<16x128xf32>
    %cst_50 = arith.constant 0.000000e+00 : f32
    %49 = vector.broadcast %cst_50 : f32 to vector<16x128xf32>
    %50 = arith.maximumf %48, %49 : vector<16x128xf32>
    %51 = vector.shape_cast %50 : vector<16x128xf32> to vector<2x4x2x128xf32>
    %cst_51 = arith.constant dense<0xFF800000> : vector<2x4x128xf32>
    %52 = vector.multi_reduction <maximumf>, %51, %cst_51 [2] : vector<2x4x2x128xf32> to vector<2x4x128xf32>
    %c232 = arith.constant 232 : index
    %c0_52 = arith.constant 0 : index
    %53 = vector.load %arg1[%c232, %c0_52] : memref<648x128xf32, #tpu.memory_space<vmem>>, vector<128x128xf32>
    %c360 = arith.constant 360 : index
    %c0_53 = arith.constant 0 : index
    %54 = vector.load %arg1[%c360, %c0_53] : memref<648x128xf32, #tpu.memory_space<vmem>>, vector<32x128xf32>
    %c392 = arith.constant 392 : index
    %c0_54 = arith.constant 0 : index
    %55 = vector.load %arg1[%c392, %c0_54] : memref<648x128xf32, #tpu.memory_space<vmem>>, vector<1x128xf32>
    %c400 = arith.constant 400 : index
    %c0_55 = arith.constant 0 : index
    %56 = vector.load %arg1[%c400, %c0_55] : memref<648x128xf32, #tpu.memory_space<vmem>>, vector<32x128xf32>
    %c432 = arith.constant 432 : index
    %c0_56 = arith.constant 0 : index
    %57 = vector.load %arg1[%c432, %c0_56] : memref<648x128xf32, #tpu.memory_space<vmem>>, vector<32x128xf32>
    %c464 = arith.constant 464 : index
    %c0_57 = arith.constant 0 : index
    %58 = vector.load %arg1[%c464, %c0_57] : memref<648x128xf32, #tpu.memory_space<vmem>>, vector<1x128xf32>
    %59 = vector.shape_cast %52 : vector<2x4x128xf32> to vector<8x128xf32>
    %cst_58 = arith.constant dense<0.000000e+00> : vector<8x128xf32>
    %60 = tpu.matmul %59, %53, %cst_58 {dimension_numbers = #tpu.dot_dimension_numbers<[1], [0], [0], [1], [0, 0, 1, 1], [], []>} : vector<8x128xf32>, vector<128x128xf32>, vector<8x128xf32> -> vector<8x128xf32>
    %61 = vector.broadcast %55 : vector<1x128xf32> to vector<8x128xf32>
    %62 = arith.addf %60, %61 : vector<8x128xf32>
    %63 = vector.shape_cast %62 : vector<8x128xf32> to vector<2x4x128xf32>
    %cst_59 = arith.constant 0.000000e+00 : f32
    %64 = vector.broadcast %cst_59 : f32 to vector<2x32xf32>
    %cst_60 = arith.constant 0.000000e+00 : f32
    %65 = vector.broadcast %cst_60 : f32 to vector<2x32xf32>
    %cst_61 = arith.constant 0.000000e+00 : f32
    %66 = vector.broadcast %cst_61 : f32 to vector<2x32xf32>
    %cst_62 = arith.constant 0.000000e+00 : f32
    %67 = vector.broadcast %cst_62 : f32 to vector<2x32xf32>
    %68 = vector.extract_strided_slice %63 {offsets = [0, 0, 0], sizes = [2, 1, 128], strides = [1, 1, 1]} : vector<2x4x128xf32> to vector<2x1x128xf32>
    %69 = vector.shape_cast %68 : vector<2x1x128xf32> to vector<2x128xf32>
    %cst_63 = arith.constant dense<0.000000e+00> : vector<2x128xf32>
    %70 = tpu.matmul %64, %54, %cst_63 {dimension_numbers = #tpu.dot_dimension_numbers<[1], [0], [0], [1], [0, 0, 1, 1], [], []>} : vector<2x32xf32>, vector<32x128xf32>, vector<2x128xf32> -> vector<2x128xf32>
    %71 = arith.addf %69, %70 : vector<2x128xf32>
    %72 = arith.negf %71 : vector<2x128xf32>
    %73 = math.exp %72 : vector<2x128xf32>
    %cst_64 = arith.constant 1.000000e+00 : f32
    %74 = vector.broadcast %cst_64 : f32 to vector<2x128xf32>
    %75 = arith.addf %74, %73 : vector<2x128xf32>
    %76 = arith.divf %74, %75 : vector<2x128xf32>
    %77 = vector.extract_strided_slice %71 {offsets = [0, 64], sizes = [2, 32], strides = [1, 1]} : vector<2x128xf32> to vector<2x32xf32>
    %78 = math.tanh %77 : vector<2x32xf32>
    %79 = vector.extract_strided_slice %76 {offsets = [0, 32], sizes = [2, 32], strides = [1, 1]} : vector<2x128xf32> to vector<2x32xf32>
    %80 = arith.mulf %79, %65 : vector<2x32xf32>
    %81 = vector.extract_strided_slice %76 {offsets = [0, 0], sizes = [2, 32], strides = [1, 1]} : vector<2x128xf32> to vector<2x32xf32>
    %82 = arith.mulf %81, %78 : vector<2x32xf32>
    %83 = arith.addf %80, %82 : vector<2x32xf32>
    %84 = vector.extract_strided_slice %76 {offsets = [0, 96], sizes = [2, 32], strides = [1, 1]} : vector<2x128xf32> to vector<2x32xf32>
    %85 = math.tanh %83 : vector<2x32xf32>
    %86 = arith.mulf %84, %85 : vector<2x32xf32>
    %87 = vector.extract_strided_slice %63 {offsets = [0, 1, 0], sizes = [2, 1, 128], strides = [1, 1, 1]} : vector<2x4x128xf32> to vector<2x1x128xf32>
    %88 = vector.shape_cast %87 : vector<2x1x128xf32> to vector<2x128xf32>
    %cst_65 = arith.constant dense<0.000000e+00> : vector<2x128xf32>
    %89 = tpu.matmul %86, %54, %cst_65 {dimension_numbers = #tpu.dot_dimension_numbers<[1], [0], [0], [1], [0, 0, 1, 1], [], []>} : vector<2x32xf32>, vector<32x128xf32>, vector<2x128xf32> -> vector<2x128xf32>
    %90 = arith.addf %88, %89 : vector<2x128xf32>
    %91 = arith.negf %90 : vector<2x128xf32>
    %92 = math.exp %91 : vector<2x128xf32>
    %cst_66 = arith.constant 1.000000e+00 : f32
    %93 = vector.broadcast %cst_66 : f32 to vector<2x128xf32>
    %94 = arith.addf %93, %92 : vector<2x128xf32>
    %95 = arith.divf %93, %94 : vector<2x128xf32>
    %96 = vector.extract_strided_slice %90 {offsets = [0, 64], sizes = [2, 32], strides = [1, 1]} : vector<2x128xf32> to vector<2x32xf32>
    %97 = math.tanh %96 : vector<2x32xf32>
    %98 = vector.extract_strided_slice %95 {offsets = [0, 32], sizes = [2, 32], strides = [1, 1]} : vector<2x128xf32> to vector<2x32xf32>
    %99 = arith.mulf %98, %83 : vector<2x32xf32>
    %100 = vector.extract_strided_slice %95 {offsets = [0, 0], sizes = [2, 32], strides = [1, 1]} : vector<2x128xf32> to vector<2x32xf32>
    %101 = arith.mulf %100, %97 : vector<2x32xf32>
    %102 = arith.addf %99, %101 : vector<2x32xf32>
    %103 = vector.extract_strided_slice %95 {offsets = [0, 96], sizes = [2, 32], strides = [1, 1]} : vector<2x128xf32> to vector<2x32xf32>
    %104 = math.tanh %102 : vector<2x32xf32>
    %105 = arith.mulf %103, %104 : vector<2x32xf32>
    %cst_67 = arith.constant dense<0.000000e+00> : vector<2x128xf32>
    %106 = tpu.matmul %86, %56, %cst_67 {dimension_numbers = #tpu.dot_dimension_numbers<[1], [0], [0], [1], [0, 0, 1, 1], [], []>} : vector<2x32xf32>, vector<32x128xf32>, vector<2x128xf32> -> vector<2x128xf32>
    %cst_68 = arith.constant dense<0.000000e+00> : vector<2x128xf32>
    %107 = tpu.matmul %66, %57, %cst_68 {dimension_numbers = #tpu.dot_dimension_numbers<[1], [0], [0], [1], [0, 0, 1, 1], [], []>} : vector<2x32xf32>, vector<32x128xf32>, vector<2x128xf32> -> vector<2x128xf32>
    %108 = arith.addf %106, %107 : vector<2x128xf32>
    %109 = vector.broadcast %58 : vector<1x128xf32> to vector<2x128xf32>
    %110 = arith.addf %108, %109 : vector<2x128xf32>
    %111 = arith.negf %110 : vector<2x128xf32>
    %112 = math.exp %111 : vector<2x128xf32>
    %cst_69 = arith.constant 1.000000e+00 : f32
    %113 = vector.broadcast %cst_69 : f32 to vector<2x128xf32>
    %114 = arith.addf %113, %112 : vector<2x128xf32>
    %115 = arith.divf %113, %114 : vector<2x128xf32>
    %116 = vector.extract_strided_slice %110 {offsets = [0, 64], sizes = [2, 32], strides = [1, 1]} : vector<2x128xf32> to vector<2x32xf32>
    %117 = math.tanh %116 : vector<2x32xf32>
    %118 = vector.extract_strided_slice %115 {offsets = [0, 32], sizes = [2, 32], strides = [1, 1]} : vector<2x128xf32> to vector<2x32xf32>
    %119 = arith.mulf %118, %67 : vector<2x32xf32>
    %120 = vector.extract_strided_slice %115 {offsets = [0, 0], sizes = [2, 32], strides = [1, 1]} : vector<2x128xf32> to vector<2x32xf32>
    %121 = arith.mulf %120, %117 : vector<2x32xf32>
    %122 = arith.addf %119, %121 : vector<2x32xf32>
    %123 = vector.extract_strided_slice %115 {offsets = [0, 96], sizes = [2, 32], strides = [1, 1]} : vector<2x128xf32> to vector<2x32xf32>
    %124 = math.tanh %122 : vector<2x32xf32>
    %125 = arith.mulf %123, %124 : vector<2x32xf32>
    %126 = vector.extract_strided_slice %63 {offsets = [0, 2, 0], sizes = [2, 1, 128], strides = [1, 1, 1]} : vector<2x4x128xf32> to vector<2x1x128xf32>
    %127 = vector.shape_cast %126 : vector<2x1x128xf32> to vector<2x128xf32>
    %cst_70 = arith.constant dense<0.000000e+00> : vector<2x128xf32>
    %128 = tpu.matmul %105, %54, %cst_70 {dimension_numbers = #tpu.dot_dimension_numbers<[1], [0], [0], [1], [0, 0, 1, 1], [], []>} : vector<2x32xf32>, vector<32x128xf32>, vector<2x128xf32> -> vector<2x128xf32>
    %129 = arith.addf %127, %128 : vector<2x128xf32>
    %130 = arith.negf %129 : vector<2x128xf32>
    %131 = math.exp %130 : vector<2x128xf32>
    %cst_71 = arith.constant 1.000000e+00 : f32
    %132 = vector.broadcast %cst_71 : f32 to vector<2x128xf32>
    %133 = arith.addf %132, %131 : vector<2x128xf32>
    %134 = arith.divf %132, %133 : vector<2x128xf32>
    %135 = vector.extract_strided_slice %129 {offsets = [0, 64], sizes = [2, 32], strides = [1, 1]} : vector<2x128xf32> to vector<2x32xf32>
    %136 = math.tanh %135 : vector<2x32xf32>
    %137 = vector.extract_strided_slice %134 {offsets = [0, 32], sizes = [2, 32], strides = [1, 1]} : vector<2x128xf32> to vector<2x32xf32>
    %138 = arith.mulf %137, %102 : vector<2x32xf32>
    %139 = vector.extract_strided_slice %134 {offsets = [0, 0], sizes = [2, 32], strides = [1, 1]} : vector<2x128xf32> to vector<2x32xf32>
    %140 = arith.mulf %139, %136 : vector<2x32xf32>
    %141 = arith.addf %138, %140 : vector<2x32xf32>
    %142 = vector.extract_strided_slice %134 {offsets = [0, 96], sizes = [2, 32], strides = [1, 1]} : vector<2x128xf32> to vector<2x32xf32>
    %143 = math.tanh %141 : vector<2x32xf32>
    %144 = arith.mulf %142, %143 : vector<2x32xf32>
    %cst_72 = arith.constant dense<0.000000e+00> : vector<2x128xf32>
    %145 = tpu.matmul %105, %56, %cst_72 {dimension_numbers = #tpu.dot_dimension_numbers<[1], [0], [0], [1], [0, 0, 1, 1], [], []>} : vector<2x32xf32>, vector<32x128xf32>, vector<2x128xf32> -> vector<2x128xf32>
    %cst_73 = arith.constant dense<0.000000e+00> : vector<2x128xf32>
    %146 = tpu.matmul %125, %57, %cst_73 {dimension_numbers = #tpu.dot_dimension_numbers<[1], [0], [0], [1], [0, 0, 1, 1], [], []>} : vector<2x32xf32>, vector<32x128xf32>, vector<2x128xf32> -> vector<2x128xf32>
    %147 = arith.addf %145, %146 : vector<2x128xf32>
    %148 = vector.broadcast %58 : vector<1x128xf32> to vector<2x128xf32>
    %149 = arith.addf %147, %148 : vector<2x128xf32>
    %150 = arith.negf %149 : vector<2x128xf32>
    %151 = math.exp %150 : vector<2x128xf32>
    %cst_74 = arith.constant 1.000000e+00 : f32
    %152 = vector.broadcast %cst_74 : f32 to vector<2x128xf32>
    %153 = arith.addf %152, %151 : vector<2x128xf32>
    %154 = arith.divf %152, %153 : vector<2x128xf32>
    %155 = vector.extract_strided_slice %149 {offsets = [0, 64], sizes = [2, 32], strides = [1, 1]} : vector<2x128xf32> to vector<2x32xf32>
    %156 = math.tanh %155 : vector<2x32xf32>
    %157 = vector.extract_strided_slice %154 {offsets = [0, 32], sizes = [2, 32], strides = [1, 1]} : vector<2x128xf32> to vector<2x32xf32>
    %158 = arith.mulf %157, %122 : vector<2x32xf32>
    %159 = vector.extract_strided_slice %154 {offsets = [0, 0], sizes = [2, 32], strides = [1, 1]} : vector<2x128xf32> to vector<2x32xf32>
    %160 = arith.mulf %159, %156 : vector<2x32xf32>
    %161 = arith.addf %158, %160 : vector<2x32xf32>
    %162 = vector.extract_strided_slice %154 {offsets = [0, 96], sizes = [2, 32], strides = [1, 1]} : vector<2x128xf32> to vector<2x32xf32>
    %163 = math.tanh %161 : vector<2x32xf32>
    %164 = arith.mulf %162, %163 : vector<2x32xf32>
    %165 = vector.extract_strided_slice %63 {offsets = [0, 3, 0], sizes = [2, 1, 128], strides = [1, 1, 1]} : vector<2x4x128xf32> to vector<2x1x128xf32>
    %166 = vector.shape_cast %165 : vector<2x1x128xf32> to vector<2x128xf32>
    %cst_75 = arith.constant dense<0.000000e+00> : vector<2x128xf32>
    %167 = tpu.matmul %144, %54, %cst_75 {dimension_numbers = #tpu.dot_dimension_numbers<[1], [0], [0], [1], [0, 0, 1, 1], [], []>} : vector<2x32xf32>, vector<32x128xf32>, vector<2x128xf32> -> vector<2x128xf32>
    %168 = arith.addf %166, %167 : vector<2x128xf32>
    %169 = arith.negf %168 : vector<2x128xf32>
    %170 = math.exp %169 : vector<2x128xf32>
    %cst_76 = arith.constant 1.000000e+00 : f32
    %171 = vector.broadcast %cst_76 : f32 to vector<2x128xf32>
    %172 = arith.addf %171, %170 : vector<2x128xf32>
    %173 = arith.divf %171, %172 : vector<2x128xf32>
    %174 = vector.extract_strided_slice %168 {offsets = [0, 64], sizes = [2, 32], strides = [1, 1]} : vector<2x128xf32> to vector<2x32xf32>
    %175 = math.tanh %174 : vector<2x32xf32>
    %176 = vector.extract_strided_slice %173 {offsets = [0, 32], sizes = [2, 32], strides = [1, 1]} : vector<2x128xf32> to vector<2x32xf32>
    %177 = arith.mulf %176, %141 : vector<2x32xf32>
    %178 = vector.extract_strided_slice %173 {offsets = [0, 0], sizes = [2, 32], strides = [1, 1]} : vector<2x128xf32> to vector<2x32xf32>
    %179 = arith.mulf %178, %175 : vector<2x32xf32>
    %180 = arith.addf %177, %179 : vector<2x32xf32>
    %181 = vector.extract_strided_slice %173 {offsets = [0, 96], sizes = [2, 32], strides = [1, 1]} : vector<2x128xf32> to vector<2x32xf32>
    %182 = math.tanh %180 : vector<2x32xf32>
    %183 = arith.mulf %181, %182 : vector<2x32xf32>
    %cst_77 = arith.constant dense<0.000000e+00> : vector<2x128xf32>
    %184 = tpu.matmul %144, %56, %cst_77 {dimension_numbers = #tpu.dot_dimension_numbers<[1], [0], [0], [1], [0, 0, 1, 1], [], []>} : vector<2x32xf32>, vector<32x128xf32>, vector<2x128xf32> -> vector<2x128xf32>
    %cst_78 = arith.constant dense<0.000000e+00> : vector<2x128xf32>
    %185 = tpu.matmul %164, %57, %cst_78 {dimension_numbers = #tpu.dot_dimension_numbers<[1], [0], [0], [1], [0, 0, 1, 1], [], []>} : vector<2x32xf32>, vector<32x128xf32>, vector<2x128xf32> -> vector<2x128xf32>
    %186 = arith.addf %184, %185 : vector<2x128xf32>
    %187 = vector.broadcast %58 : vector<1x128xf32> to vector<2x128xf32>
    %188 = arith.addf %186, %187 : vector<2x128xf32>
    %189 = arith.negf %188 : vector<2x128xf32>
    %190 = math.exp %189 : vector<2x128xf32>
    %cst_79 = arith.constant 1.000000e+00 : f32
    %191 = vector.broadcast %cst_79 : f32 to vector<2x128xf32>
    %192 = arith.addf %191, %190 : vector<2x128xf32>
    %193 = arith.divf %191, %192 : vector<2x128xf32>
    %194 = vector.extract_strided_slice %188 {offsets = [0, 64], sizes = [2, 32], strides = [1, 1]} : vector<2x128xf32> to vector<2x32xf32>
    %195 = math.tanh %194 : vector<2x32xf32>
    %196 = vector.extract_strided_slice %193 {offsets = [0, 32], sizes = [2, 32], strides = [1, 1]} : vector<2x128xf32> to vector<2x32xf32>
    %197 = arith.mulf %196, %161 : vector<2x32xf32>
    %198 = vector.extract_strided_slice %193 {offsets = [0, 0], sizes = [2, 32], strides = [1, 1]} : vector<2x128xf32> to vector<2x32xf32>
    %199 = arith.mulf %198, %195 : vector<2x32xf32>
    %200 = arith.addf %197, %199 : vector<2x32xf32>
    %201 = vector.extract_strided_slice %193 {offsets = [0, 96], sizes = [2, 32], strides = [1, 1]} : vector<2x128xf32> to vector<2x32xf32>
    %202 = math.tanh %200 : vector<2x32xf32>
    %203 = arith.mulf %201, %202 : vector<2x32xf32>
    %cst_80 = arith.constant dense<0.000000e+00> : vector<2x128xf32>
    %204 = tpu.matmul %183, %56, %cst_80 {dimension_numbers = #tpu.dot_dimension_numbers<[1], [0], [0], [1], [0, 0, 1, 1], [], []>} : vector<2x32xf32>, vector<32x128xf32>, vector<2x128xf32> -> vector<2x128xf32>
    %cst_81 = arith.constant dense<0.000000e+00> : vector<2x128xf32>
    %205 = tpu.matmul %203, %57, %cst_81 {dimension_numbers = #tpu.dot_dimension_numbers<[1], [0], [0], [1], [0, 0, 1, 1], [], []>} : vector<2x32xf32>, vector<32x128xf32>, vector<2x128xf32> -> vector<2x128xf32>
    %206 = arith.addf %204, %205 : vector<2x128xf32>
    %207 = vector.broadcast %58 : vector<1x128xf32> to vector<2x128xf32>
    %208 = arith.addf %206, %207 : vector<2x128xf32>
    %209 = arith.negf %208 : vector<2x128xf32>
    %210 = math.exp %209 : vector<2x128xf32>
    %cst_82 = arith.constant 1.000000e+00 : f32
    %211 = vector.broadcast %cst_82 : f32 to vector<2x128xf32>
    %212 = arith.addf %211, %210 : vector<2x128xf32>
    %213 = arith.divf %211, %212 : vector<2x128xf32>
    %214 = vector.extract_strided_slice %208 {offsets = [0, 64], sizes = [2, 32], strides = [1, 1]} : vector<2x128xf32> to vector<2x32xf32>
    %215 = math.tanh %214 : vector<2x32xf32>
    %216 = vector.extract_strided_slice %213 {offsets = [0, 32], sizes = [2, 32], strides = [1, 1]} : vector<2x128xf32> to vector<2x32xf32>
    %217 = arith.mulf %216, %200 : vector<2x32xf32>
    %218 = vector.extract_strided_slice %213 {offsets = [0, 0], sizes = [2, 32], strides = [1, 1]} : vector<2x128xf32> to vector<2x32xf32>
    %219 = arith.mulf %218, %215 : vector<2x32xf32>
    %220 = arith.addf %217, %219 : vector<2x32xf32>
    %221 = vector.extract_strided_slice %213 {offsets = [0, 96], sizes = [2, 32], strides = [1, 1]} : vector<2x128xf32> to vector<2x32xf32>
    %222 = math.tanh %220 : vector<2x32xf32>
    %223 = arith.mulf %221, %222 : vector<2x32xf32>
    %c472 = arith.constant 472 : index
    %c0_83 = arith.constant 0 : index
    %224 = vector.load %arg1[%c472, %c0_83] : memref<648x128xf32, #tpu.memory_space<vmem>>, vector<32x128xf32>
    %cst_84 = arith.constant dense<0.000000e+00> : vector<2x128xf32>
    %225 = tpu.matmul %223, %224, %cst_84 {dimension_numbers = #tpu.dot_dimension_numbers<[1], [0], [0], [1], [0, 0, 1, 1], [], []>} : vector<2x32xf32>, vector<32x128xf32>, vector<2x128xf32> -> vector<2x128xf32>
    %c504 = arith.constant 504 : index
    %c0_85 = arith.constant 0 : index
    %226 = vector.load %arg1[%c504, %c0_85] : memref<648x128xf32, #tpu.memory_space<vmem>>, vector<1x128xf32>
    %227 = vector.broadcast %226 : vector<1x128xf32> to vector<2x128xf32>
    %228 = arith.addf %225, %227 : vector<2x128xf32>
    %cst_86 = arith.constant 0.000000e+00 : f32
    %229 = vector.broadcast %cst_86 : f32 to vector<2x128xf32>
    %230 = arith.maximumf %228, %229 : vector<2x128xf32>
    %c512 = arith.constant 512 : index
    %c0_87 = arith.constant 0 : index
    %231 = vector.load %arg1[%c512, %c0_87] : memref<648x128xf32, #tpu.memory_space<vmem>>, vector<128x128xf32>
    %cst_88 = arith.constant dense<0.000000e+00> : vector<2x128xf32>
    %232 = tpu.matmul %230, %231, %cst_88 {dimension_numbers = #tpu.dot_dimension_numbers<[1], [0], [0], [1], [0, 0, 1, 1], [], []>} : vector<2x128xf32>, vector<128x128xf32>, vector<2x128xf32> -> vector<2x128xf32>
    %c640 = arith.constant 640 : index
    %c0_89 = arith.constant 0 : index
    %233 = vector.load %arg1[%c640, %c0_89] : memref<648x128xf32, #tpu.memory_space<vmem>>, vector<1x128xf32>
    %234 = vector.broadcast %233 : vector<1x128xf32> to vector<2x128xf32>
    %235 = arith.addf %232, %234 : vector<2x128xf32>
    %c0_90 = arith.constant 0 : index
    %c0_91 = arith.constant 0 : index
    %236 = vector.load %arg2[%c0_90, %c0_91] : memref<2x128xf32, #tpu.memory_space<vmem>>, vector<2x128xf32>
    tpu.vector_store %arg2[%c0_90, %c0_91], %235 {strides = array<i32>} : memref<2x128xf32, #tpu.memory_space<vmem>>, vector<2x128xf32>,
    return
  }
}

</mosaic_0001>

<bundles_post_ra>
// kernel: forward.1
= control target key start
LH: loop header
LB: loop body
LE: loop exit
PB: predicated region body
PF: predicated region fallthrough
CT: control target
= control target key end

     0   :  { %7 = vsyncpa [#allocation5], 0  ;;  %s2002_s0 = inlined_call_operand.vmem [shape: f32[2,16,8], index: 0, kind: input, shape index: {}]   ;;  %s2003_s1 = inlined_call_operand.hbm [shape: f32[648,128], index: 1, kind: input, shape index: {}]   ;;  %s2004_s2 = inlined_call_operand.hbm [shape: f32[2,128], index: 2, kind: output, shape index: {}]  }
   0x1   :  { %8 = vsyncpa [#allocation6], 0  ;;  %s15_s11 = sshll.u32 %s2003_s1, 4  ;;  %s1728_s12 = smov [#allocation4]   ;;  %s16_s11 = int_to_ptr.hbm [resolvable:$true] %s15_s11 }
   0x2   :  { %s17_s13 = sshll.u32 %s1728_s12, 4  ;;  %s1729_s14 = smov 128   ;;  %s18_s13 = int_to_ptr.vmem [resolvable:$true] %s17_s13 }
   0x3   :  { %s1730_s15 = smov 8  }
   0x4   :  { %23 = dma.hbm_to_vmem [thread:$0]  %s16_s11, 10368, %s18_s13, [#allocation5], %s1729_s14, %s1729_s14, %s1730_s15  }
   0x5   :  { %1724 = dma.done.wait [#allocation5], 10368  }
   0x6   :  { %1725 = vsyncadd [#allocation5], 4294956928  ;;  %vm33_vm0 = vcmask 64512   ;;  %vm36_vm1 = vcmask 58368   ;;  %v1731_v0 = vmov 0.0   ;;  %v141_v1 = vld [vmem:[#allocation4 + $0x10] sm:$0xff] }
   0x7   :  { %34 = vst.msk [vmem:[#allocation2] sm:$0xff] %vm33_vm0, %v1731_v0  ;;  %v28_v2 = vld [vmem:[%s2002_s0] sm:$0xff]  ;;  %v29_v3 = vld [vmem:[%s2002_s0 + $0x8] sm:$0xff]  ;;  %169 = vmatpush.msra.mxu2 %v141_v1  ;;  %v54_v4 = vld [vmem:[#allocation4 + $0x8] sm:$0xff]  ;;  %vm224_vm2 = vcmask 517120   ;;  %vm338_vm3 = vcmask 523264  }
   0x8   :  { %35 = vst.msk [vmem:[#allocation2 + $0x8] sm:$0xff] %vm33_vm0, %v1731_v0  ;;  %v49_v5 = vld [vmem:[#allocation4] sm:$0xff]  ;;  %82 = vmatpush.msra.mxu0 %v54_v4  ;;  %v31_v7 = vld [vmem:[%s2002_s0 + $0x18] sm:$0xff]  ;;  %v1795_v23 = vld [vmem:[#allocation4 + $0x18] ss:$0 sm:$0xff]  ;;  %vm359_vm4 = vcmask 1041409  }
   0x9   :  { %37 = vst.msk [vmem:[#allocation2 + $0x10] sm:$0x3] %vm36_vm1, %v1731_v0  ;;  %v30_v6 = vld [vmem:[%s2002_s0 + $0x10] sm:$0xff]  ;;  %123 = vmatpush.msra.mxu1 %v49_v5  ;;  %1566 = vmatpush.msra.mxu3 %v49_v5  ;;  %v403_v27 = vld [vmem:[#allocation4 + $0x98] sm:$0xff]  ;;  %v402_v31 = vld [vmem:[#allocation4 + $0x90] sm:$0xff]  ;;  %vm361_vm5 = vcmask 1042434  }
   0xa   :  { %38 = vst.msk [vmem:[#allocation2 + $0x18] sm:$0xff] %vm33_vm0, %v1731_v0  ;;  %v471_v28 = vld [vmem:[#allocation4 + $0xd8] sm:$0xff]  ;;  %v470_v32 = vld [vmem:[#allocation4 + $0xd0] sm:$0xff]  ;;  %v401_v35 = vld [vmem:[#allocation4 + $0x88] sm:$0xff]  ;;  %vm363_vm6 = vcmask 1043459   ;;  %vm365_vm7 = vcmask 1044484  }
   0xb   :  { %39 = vst.msk [vmem:[#allocation2 + $0x20] sm:$0xff] %vm33_vm0, %v1731_v0  ;;  %418 = vmatpush.msrb.mxu3 %v403_v27  ;;  %486 = vmatpush.msrb.mxu0 %v471_v28  ;;  %v469_v36 = vld [vmem:[#allocation4 + $0xc8] sm:$0xff]  ;;  %v400_v41 = vld [vmem:[#allocation4 + $0x80] sm:$0xff]  ;;  %v399_v51 = vld [vmem:[#allocation4 + $0x78] sm:$0xff]  ;;  %vm367_vm8 = vcmask 1045509   ;;  %vm369_vm9 = vcmask 1046534  }
   0xc   :  { %40 = vst.msk [vmem:[#allocation2 + $0x28] sm:$0x3] %vm36_vm1, %v1731_v0  ;;  %v468_v42 = vld [vmem:[#allocation4 + $0xc0] sm:$0xff]  ;;  %v467_v52 = vld [vmem:[#allocation4 + $0xb8] sm:$0xff]  ;;  %v398_v58 = vld [vmem:[#allocation4 + $0x70] sm:$0xff]  ;;  %vm371_vm10 = vcmask 1047559  }
   0xd   :  { %41 = vst.msk [vmem:[#allocation2 + $0x1] sm:$0xff] %vm33_vm0, %v28_v2  ;;  %419 = vmatpush.msrb.mxu3 %v402_v31  ;;  %487 = vmatpush.msrb.mxu0 %v470_v32  ;;  %v466_v59 = vld [vmem:[#allocation4 + $0xb0] sm:$0xff]  ;;  %v465_v4 = vld [vmem:[#allocation4 + $0xa8] sm:$0xff]  ;;  %vm522_vm11 = vcmask 1041408   ;;  %s1732_s0 = smov 64   ;;  %s1733_s23 = smov 32  }
   0xe   :  { %42 = vst.msk [vmem:[#allocation2 + $0x9] sm:$0xff] %vm33_vm0, %v29_v3  ;;  %v397_v3 = vld [vmem:[#allocation4 + $0x68] sm:$0xff]  ;;  %s1734_s24 = smov [#allocation7]   ;;  %s1515_s28 = sshll.u32 %s2004_s2, 4  ;;  %s1516_s28 = int_to_ptr.hbm [resolvable:$true] %s1515_s28 }
   0xf   :  { %43 = vst.msk [vmem:[#allocation2 + $0x19] sm:$0xff] %vm33_vm0, %v30_v6  ;;  %420 = vmatpush.msrb.mxu3 %v401_v35  ;;  %488 = vmatpush.msrb.mxu0 %v469_v36  ;;  %s1513_s25 = sshll.u32 %s1734_s24, 4  ;;  %s1514_s25 = int_to_ptr.vmem [resolvable:$true] %s1513_s25 }
  0x10   :  { %44 = vst.msk [vmem:[#allocation2 + $0x21] sm:$0xff] %vm33_vm0, %v31_v7 }
  0x11   :  { %340 = vst.msk [vmem:[#allocation3 + $0x8] sm:$0x3] %vm224_vm2, %v1731_v0  ;;  %421 = vmatpush.msrb.mxu3 %v400_v41  ;;  %489 = vmatpush.msrb.mxu0 %v468_v42 }
  0x12   :  { %342 = vst.msk [vmem:[#allocation3 + $0x18] sm:$0x3] %vm224_vm2, %v1731_v0 }
  0x13   :  { %339 = vst.msk [vmem:[#allocation3] sm:$0xff] %vm338_vm3, %v1731_v0  ;;  %422 = vmatpush.msrb.mxu3 %v399_v51  ;;  %490 = vmatpush.msrb.mxu0 %v467_v52  ;;  %v392_v51 = vld [vmem:[#allocation4 + $0x50] sm:$0xff] }
  0x14   :  { %v50_v8 = vld [vmem:[#allocation2 + $0x1] sm:$0xff]  ;;  %341 = vst.msk [vmem:[#allocation3 + $0x10] sm:$0xff] %vm338_vm3, %v1731_v0 }
  0x15   :  { %v45_v9 = vld [vmem:[#allocation2] sm:$0xff]  ;;  %1525 = vmatmul.msk.f32.vlgmr.msra.gmra.mxu0 %vm33_vm0, %v50_v8  ;;  %v51_v12 = vld [vmem:[#allocation2 + $0x9] sm:$0xff]  ;;  %423 = vmatpush.msrb.mxu3 %v398_v58 }
  0x16   :  { %v137_v10 = vld [vmem:[#allocation2 + $0x2] sm:$0xff]  ;;  %1529 = vmatmul.msk.f32.vlgmr.msra.gmra.mxu1 %vm33_vm0, %v45_v9  ;;  %v47_v11 = vld [vmem:[#allocation2 + $0x18] sm:$0xff]  ;;  %v138_v14 = vld [vmem:[#allocation2 + $0xa] sm:$0xff]  ;;  %491 = vmatpush.msrb.mxu0 %v466_v59 }
  0x17   :  { %1533 = vmatmul.msk.f32.vlgmr.msra.gmra.mxu2 %vm33_vm0, %v137_v10  ;;  %1531 = vmatmul.msk.f32.vlgmr.msra.gmra.mxu3 %vm33_vm0, %v47_v11  ;;  %v46_v13 = vld [vmem:[#allocation2 + $0x8] sm:$0xff]  ;;  %v48_v15 = vld [vmem:[#allocation2 + $0x20] sm:$0xff] }
  0x18   :  { %v52_v16 = vld [vmem:[#allocation2 + $0x19] sm:$0xff]  ;;  %v53_v18 = vld [vmem:[#allocation2 + $0x21] sm:$0xff]  ;;  %424 = vmatpush.msrb.mxu3 %v397_v3  ;;  %492 = vmatpush.msrb.mxu0 %v465_v4 }
  0x19   :  { %v139_v17 = vld [vmem:[#allocation2 + $0x1a] sm:$0xff]  ;;  %v140_v19 = vld [vmem:[#allocation2 + $0x22] sm:$0xff] }
  0x1d   :  { %1526 = vmatmul.msk.f32.gmra.mxu0 %vm33_vm0, %v51_v12 }
  0x1e   :  { %1530 = vmatmul.msk.f32.gmra.mxu1 %vm33_vm0, %v46_v13  ;;  %v396_v13 = vld [vmem:[#allocation4 + $0x60] sm:$0xff] }
  0x1f   :  { %1534 = vmatmul.msk.f32.gmra.mxu2 %vm33_vm0, %v138_v14  ;;  %1532 = vmatmul.msk.f32.gmra.mxu3 %vm33_vm0, %v48_v15  ;;  %v464_v14 = vld [vmem:[#allocation4 + $0xa0] sm:$0xff] }
  0x20   :  { %425 = vmatpush.msrb.mxu3 %v396_v13  ;;  %493 = vmatpush.msrb.mxu0 %v464_v14 }
  0x25   :  { %1527 = vmatmul.msk.f32.gmra.mxu0 %vm33_vm0, %v52_v16 }
  0x27   :  { %1535 = vmatmul.msk.f32.gmra.mxu2 %vm33_vm0, %v139_v17 }
  0x2d   :  { %1528 = vmatmul.msk.f32.gmra.mxu0 %vm33_vm0, %v53_v18 }
  0x2f   :  { %1536 = vmatmul.msk.f32.gmra.mxu2 %vm33_vm0, %v140_v19 }
  0x92   :  { %v84_v20 = vpop.f32.mrf.mxu0 }
  0x93   :  { %v125_v21 = vpop.f32.mrf.mxu1 }
  0x94   :  { %v126_v22 = vadd.f32 %v125_v21, %v84_v20 }
  0x9a   :  { %v171_v24 = vpop.f32.mrf.mxu2  ;;  %v87_v26 = vpop.f32.mrf.mxu0 }
  0x9b   :  { %v183_v25 = vadd.f32 %v171_v24, %v126_v22  ;;  %v128_v29 = vpop.f32.mrf.mxu1  ;;  %v131_v50 = vpop.f32.mrf.mxu3 }
  0x9c   :  { %v129_v34 = vadd.f32 %v128_v29, %v87_v26 }
  0x9d   :  { %v188_v30 = vadd.f32 %v1795_v23, %v183_v25 }
  0x9f   :  { %v192_v33 = vmax.f32 %v188_v30, 0.0 }
  0xa1   :  { %v200_v37 = vrot.slane %v192_v33, 2  ;;  %v201_v38 = vrot.slane %v192_v33, 4  ;;  %v202_v39 = vrot.slane %v192_v33, 6  ;;  %v225_v40 = vsel %vm224_vm2, %v192_v33, -inf }
  0xa2   :  { %v226_v43 = vrot.slane %v225_v40, 4  ;;  %v174_v44 = vpop.f32.mrf.mxu2  ;;  %v90_v49 = vpop.f32.mrf.mxu0 }
  0xa3   :  { %v232_v45 = vsel %vm224_vm2, %v200_v37, -inf  ;;  %v239_v46 = vsel %vm224_vm2, %v201_v38, -inf  ;;  %v246_v47 = vsel %vm224_vm2, %v202_v39, -inf  ;;  %v184_v48 = vadd.f32 %v174_v44, %v129_v34  ;;  %v134_v33 = vpop.f32.mrf.mxu3 }
  0xa4   :  { %v227_v53 = vmax.f32 %v225_v40, %v226_v43  ;;  %v233_v54 = vrot.slane %v232_v45, 4  ;;  %v240_v55 = vrot.slane %v239_v46, 4  ;;  %v247_v56 = vrot.slane %v246_v47, 4 }
  0xa5   :  { %v189_v57 = vadd.f32 %v1795_v23, %v184_v48  ;;  %v132_v2 = vadd.f32 %v131_v50, %v90_v49  ;;  %v393_v50 = vld [vmem:[#allocation4 + $0x58] sm:$0xff] }
  0xa6   :  { %v228_v60 = vrot.slane %v227_v53, 2  ;;  %v234_v61 = vmax.f32 %v232_v45, %v233_v54  ;;  %v241_v62 = vmax.f32 %v239_v46, %v240_v55  ;;  %v248_v63 = vmax.f32 %v246_v47, %v247_v56  ;;  %447 = vmatpush.msra.mxu3 %v393_v50 }
  0xa7   :  { %v193_v1 = vmax.f32 %v189_v57, 0.0 }
  0xa8   :  { %v229_v5 = vmax.f32 %v227_v53, %v228_v60  ;;  %v235_v6 = vrot.slane %v234_v61, 2  ;;  %v242_v7 = vrot.slane %v241_v62, 2  ;;  %v249_v8 = vrot.slane %v248_v63, 2  ;;  %v391_v60 = vld [vmem:[#allocation4 + $0x48] sm:$0xff]  ;;  %448 = vmatpush.msra.mxu3 %v392_v51 }
  0xa9   :  { %v203_v9 = vrot.slane %v193_v1, 2  ;;  %v204_v10 = vrot.slane %v193_v1, 4  ;;  %v205_v11 = vrot.slane %v193_v1, 6  ;;  %v253_v12 = vsel %vm224_vm2, %v193_v1, -inf }
  0xaa   :  { %v230_v15 = vrot.slane %v229_v5, 1  ;;  %v236_v16 = vmax.f32 %v234_v61, %v235_v6  ;;  %v243_v17 = vmax.f32 %v241_v62, %v242_v7  ;;  %v250_v18 = vmax.f32 %v248_v63, %v249_v8  ;;  %v177_v19 = vpop.f32.mrf.mxu2  ;;  %v93_v32 = vpop.f32.mrf.mxu0  ;;  %v390_v6 = vld [vmem:[#allocation4 + $0x40] sm:$0xff]  ;;  %449 = vmatpush.msra.mxu3 %v391_v60 }
  0xab   :  { %v254_v20 = vrot.slane %v253_v12, 4  ;;  %v260_v21 = vsel %vm224_vm2, %v203_v9, -inf  ;;  %v267_v22 = vsel %vm224_vm2, %v204_v10, -inf  ;;  %v274_v24 = vsel %vm224_vm2, %v205_v11, -inf }
  0xac   :  { %v237_v25 = vrot.slane %v236_v16, 1  ;;  %v244_v26 = vrot.slane %v243_v17, 1  ;;  %v251_v27 = vrot.slane %v250_v18, 1  ;;  %v261_v29 = vrot.slane %v260_v21, 4  ;;  %450 = vmatpush.msra.mxu3 %v390_v6 }
  0xad   :  { %v255_v28 = vmax.f32 %v253_v12, %v254_v20  ;;  %v268_v30 = vrot.slane %v267_v22, 4  ;;  %v275_v31 = vrot.slane %v274_v24, 4  ;;  %v231_v34 = vmax.f32 %v229_v5, %v230_v15 }
  0xae   :  { %v238_v35 = vmax.f32 %v236_v16, %v237_v25  ;;  %v245_v36 = vmax.f32 %v243_v17, %v244_v26  ;;  %v185_v37 = vadd.f32 %v177_v19, %v132_v2  ;;  %v262_v39 = vmax.f32 %v260_v21, %v261_v29  ;;  %v388_v25 = vld [vmem:[#allocation4 + $0x30] sm:$0xff] }
  0xaf   :  { %v256_v38 = vrot.slane %v255_v28, 2  ;;  %v269_v40 = vmax.f32 %v267_v22, %v268_v30  ;;  %v276_v41 = vmax.f32 %v274_v24, %v275_v31  ;;  %v252_v42 = vmax.f32 %v250_v18, %v251_v27  ;;  %v389_v24 = vld [vmem:[#allocation4 + $0x38] sm:$0xff] }
  0xb0   :  { %v360_v43 = vsel %vm359_vm4, %v238_v35, %v231_v34  ;;  %v190_v44 = vadd.f32 %v1795_v23, %v185_v37  ;;  %v135_v45 = vadd.f32 %v134_v33, %v93_v32  ;;  %v263_v48 = vrot.slane %v262_v39, 2  ;;  %451 = vmatpush.msra.mxu3 %v389_v24  ;;  %v387_v33 = vld [vmem:[#allocation4 + $0x28] sm:$0xff] }
  0xb1   :  { %v362_v46 = vsel %vm361_vm5, %v245_v36, %v360_v43  ;;  %v257_v47 = vmax.f32 %v255_v28, %v256_v38  ;;  %v270_v49 = vrot.slane %v269_v40, 2  ;;  %v277_v53 = vrot.slane %v276_v41, 2 }
  0xb2   :  { %v364_v52 = vsel %vm363_vm6, %v252_v42, %v362_v46  ;;  %v194_v54 = vmax.f32 %v190_v44, 0.0  ;;  %v180_v55 = vpop.f32.mrf.mxu2  ;;  %v264_v57 = vmax.f32 %v262_v39, %v263_v48  ;;  %452 = vmatpush.msra.mxu3 %v388_v25  ;;  %v386_v39 = vld [vmem:[#allocation4 + $0x20] sm:$0xff] }
  0xb3   :  { %v258_v56 = vrot.slane %v257_v47, 1  ;;  %v271_v58 = vmax.f32 %v269_v40, %v270_v49  ;;  %v186_v59 = vadd.f32 %v180_v55, %v135_v45  ;;  %v278_v61 = vmax.f32 %v276_v41, %v277_v53 }
  0xb4   :  { %v206_v62 = vrot.slane %v194_v54, 2  ;;  %v207_v63 = vrot.slane %v194_v54, 4  ;;  %v208_v1 = vrot.slane %v194_v54, 6  ;;  %v265_v3 = vrot.slane %v264_v57, 1  ;;  %453 = vmatpush.msra.mxu3 %v387_v33  ;;  %v591_v33 = vld [vmem:[#allocation4 + $0x148] sm:$0xff] }
  0xb5   :  { %v259_v2 = vmax.f32 %v257_v47, %v258_v56  ;;  %v272_v4 = vrot.slane %v271_v58, 1  ;;  %v281_v5 = vsel %vm224_vm2, %v194_v54, -inf  ;;  %v279_v7 = vrot.slane %v278_v61, 1 }
  0xb6   :  { %v282_v8 = vrot.slane %v281_v5, 4  ;;  %v288_v9 = vsel %vm224_vm2, %v206_v62, -inf  ;;  %v295_v10 = vsel %vm224_vm2, %v207_v63, -inf  ;;  %v266_v11 = vmax.f32 %v264_v57, %v265_v3  ;;  %454 = vmatpush.msra.mxu3 %v386_v39  ;;  %v585_v39 = vld [vmem:[#allocation4 + $0x118] sm:$0xff] }
  0xb7   :  { %v273_v12 = vmax.f32 %v271_v58, %v272_v4  ;;  %v366_v13 = vsel %vm365_vm7, %v259_v2, %v364_v52  ;;  %v289_v14 = vrot.slane %v288_v9, 4  ;;  %v280_v15 = vmax.f32 %v278_v61, %v279_v7 }
  0xb8   :  { %v283_v16 = vmax.f32 %v281_v5, %v282_v8  ;;  %v296_v17 = vrot.slane %v295_v10, 4  ;;  %v302_v18 = vsel %vm224_vm2, %v208_v1, -inf  ;;  %v368_v19 = vsel %vm367_vm8, %v266_v11, %v366_v13 }
  0xb9   :  { %v290_v20 = vmax.f32 %v288_v9, %v289_v14  ;;  %v303_v21 = vrot.slane %v302_v18, 4  ;;  %v191_v22 = vadd.f32 %v1795_v23, %v186_v59  ;;  %v370_v26 = vsel %vm369_vm9, %v273_v12, %v368_v19 }
  0xba   :  { %v284_v27 = vrot.slane %v283_v16, 2  ;;  %v297_v28 = vmax.f32 %v295_v10, %v296_v17  ;;  %v372_v29 = vsel %vm371_vm10, %v280_v15, %v370_v26 }
  0xbb   :  { %v291_v30 = vrot.slane %v290_v20, 2  ;;  %v304_v31 = vmax.f32 %v302_v18, %v303_v21  ;;  %v195_v32 = vmax.f32 %v191_v22, 0.0  ;;  %382 = vst.msk [vmem:[#allocation3 + $0x1] sm:$0xff] %vm338_vm3, %v372_v29 }
  0xbc   :  { %v285_v34 = vmax.f32 %v283_v16, %v284_v27  ;;  %v298_v35 = vrot.slane %v297_v28, 2 }
  0xbd   :  { %v292_v36 = vmax.f32 %v290_v20, %v291_v30  ;;  %v305_v23 = vrot.slane %v304_v31, 2  ;;  %v209_v37 = vrot.slane %v195_v32, 2  ;;  %v210_v38 = vrot.slane %v195_v32, 4  ;;  %v594_v30 = vld [vmem:[#allocation4 + $0x160] sm:$0xff] }
  0xbe   :  { %v286_v40 = vrot.slane %v285_v34, 1  ;;  %v299_v41 = vmax.f32 %v297_v28, %v298_v35  ;;  %v211_v42 = vrot.slane %v195_v32, 6  ;;  %v309_v43 = vsel %vm224_vm2, %v195_v32, -inf  ;;  %626 = vmatpush.msrb.mxu2 %v594_v30  ;;  %v592_v32 = vld [vmem:[#allocation4 + $0x150] sm:$0xff]  ;;  %v589_v35 = vld [vmem:[#allocation4 + $0x138] sm:$0xff] }
  0xbf   :  { %v293_v44 = vrot.slane %v292_v36, 1  ;;  %v310_v45 = vrot.slane %v309_v43, 4  ;;  %v316_v46 = vsel %vm224_vm2, %v209_v37, -inf  ;;  %v306_v48 = vmax.f32 %v304_v31, %v305_v23  ;;  %v593_v31 = vld [vmem:[#allocation4 + $0x158] sm:$0xff]  ;;  %v588_v23 = vld [vmem:[#allocation4 + $0x130] sm:$0xff]  ;;  %v587_v37 = vld [vmem:[#allocation4 + $0x128] sm:$0xff] }
  0xc0   :  { %v300_v47 = vrot.slane %v299_v41, 1  ;;  %v317_v49 = vrot.slane %v316_v46, 4  ;;  %v323_v50 = vsel %vm224_vm2, %v210_v38, -inf  ;;  %v287_v54 = vmax.f32 %v285_v34, %v286_v40  ;;  %627 = vmatpush.msrb.mxu2 %v593_v31  ;;  %v590_v34 = vld [vmem:[#allocation4 + $0x140] sm:$0xff] }
  0xc1   :  { %v294_v51 = vmax.f32 %v292_v36, %v293_v44  ;;  %v311_v52 = vmax.f32 %v309_v43, %v310_v45  ;;  %v324_v53 = vrot.slane %v323_v50, 4  ;;  %v330_v56 = vsel %vm224_vm2, %v211_v42, -inf  ;;  %v586_v38 = vld [vmem:[#allocation4 + $0x120] sm:$0xff]  ;;  %v583_v42 = vld [vmem:[#allocation4 + $0x108] sm:$0xff]  ;;  %v581_v44 = vld [vmem:[#allocation4 + $0xf8] sm:$0xff] }
  0xc2   :  { %v318_v55 = vmax.f32 %v316_v46, %v317_v49  ;;  %v301_v57 = vmax.f32 %v299_v41, %v300_v47  ;;  %v394_v60 = vld [vmem:[#allocation3 + $0x1] sm:$0xff]  ;;  %v307_v62 = vrot.slane %v306_v48, 1  ;;  %v331_v2 = vrot.slane %v330_v56, 4  ;;  %628 = vmatpush.msrb.mxu2 %v592_v32  ;;  %v584_v41 = vld [vmem:[#allocation4 + $0x110] sm:$0xff] }
  0xc3   :  { %v312_v58 = vrot.slane %v311_v52, 2  ;;  %v325_v59 = vmax.f32 %v323_v50, %v324_v53  ;;  %v462_v61 = vld [vmem:[#allocation3 + $0x2] sm:$0xff]  ;;  %v373_v63 = vsel %vm359_vm4, %v294_v51, %v287_v54  ;;  %1537 = vmatmul.msk.f32.vlgmr.msrb.gmra.mxu3 %vm338_vm3, %v394_v60  ;;  %v580_v45 = vld [vmem:[#allocation4 + $0xf0] sm:$0xff]  ;;  %v1845_v54 = vld [vmem:[#allocation4 + $0x178] sm:$0xff] }
  0xc4   :  { %v319_v1 = vrot.slane %v318_v55, 2  ;;  %1541 = vmatmul.msk.f32.vlgmr.msrb.gmra.mxu0 %vm338_vm3, %v462_v61  ;;  %v332_v6 = vmax.f32 %v330_v56, %v331_v2  ;;  %v374_v7 = vsel %vm361_vm5, %v301_v57, %v373_v63  ;;  %v308_v10 = vmax.f32 %v306_v48, %v307_v62  ;;  %v384_v28 = vld [vmem:[#allocation3] sm:$0xff]  ;;  %629 = vmatpush.msrb.mxu2 %v591_v33  ;;  %v579_v49 = vld [vmem:[#allocation4 + $0xe8] sm:$0xff]  ;;  %v1849_v56 = vld [vmem:[#allocation4 + $0x170] sm:$0xff] }
  0xc5   :  { %v313_v3 = vmax.f32 %v311_v52, %v312_v58  ;;  %v326_v4 = vrot.slane %v325_v59, 2  ;;  %v582_v43 = vld [vmem:[#allocation4 + $0x100] sm:$0xff]  ;;  %v1855_v62 = vld [vmem:[#allocation4 + $0x168] sm:$0xff] }
  0xc6   :  { %v320_v5 = vmax.f32 %v318_v55, %v319_v1  ;;  %v333_v12 = vrot.slane %v332_v6, 2  ;;  %v375_v15 = vsel %vm363_vm6, %v308_v10, %v374_v7  ;;  %630 = vmatpush.msrb.mxu2 %v590_v34  ;;  %v1575_v48 = vld [vmem:[#allocation4 + $0xe0] ss:$0 sm:$0xff] }
  0xc7   :  { %v314_v8 = vrot.slane %v313_v3, 1  ;;  %v327_v9 = vmax.f32 %v325_v59, %v326_v4  ;;  %v1843_v53 = vld [vmem:[#allocation4 + $0x180] sm:$0xff] }
  0xc8   :  { %v321_v11 = vrot.slane %v320_v5, 1  ;;  %v334_v17 = vmax.f32 %v332_v6, %v333_v12  ;;  %631 = vmatpush.msrb.mxu2 %v589_v35  ;;  %774 = vmatpush.msrb.mxu1 %v1843_v53 }
  0xc9   :  { %v315_v13 = vmax.f32 %v313_v3, %v314_v8  ;;  %v328_v14 = vrot.slane %v327_v9, 1  ;;  %968 = vmatpush.msra.mxu0 %v1843_v53 }
  0xca   :  { %v322_v16 = vmax.f32 %v320_v5, %v321_v11  ;;  %v335_v20 = vrot.slane %v334_v17, 1  ;;  %632 = vmatpush.msrb.mxu2 %v588_v23  ;;  %775 = vmatpush.msrb.mxu1 %v1845_v54 }
  0xcb   :  { %v329_v18 = vmax.f32 %v327_v9, %v328_v14  ;;  %v376_v19 = vsel %vm365_vm7, %v315_v13, %v375_v15  ;;  %969 = vmatpush.msra.mxu0 %v1845_v54 }
  0xcc   :  { %v377_v21 = vsel %vm367_vm8, %v322_v16, %v376_v19  ;;  %v336_v24 = vmax.f32 %v334_v17, %v335_v20  ;;  %633 = vmatpush.msrb.mxu2 %v587_v37  ;;  %776 = vmatpush.msrb.mxu1 %v1849_v56 }
  0xcd   :  { %v378_v22 = vsel %vm369_vm9, %v329_v18, %v377_v21  ;;  %970 = vmatpush.msra.mxu0 %v1849_v56 }
  0xce   :  { %v379_v25 = vsel %vm371_vm10, %v336_v24, %v378_v22  ;;  %634 = vmatpush.msrb.mxu2 %v586_v38  ;;  %777 = vmatpush.msrb.mxu1 %v1855_v62 }
  0xcf   :  { %383 = vst.msk [vmem:[#allocation3 + $0x11] sm:$0xff] %vm338_vm3, %v379_v25  ;;  %971 = vmatpush.msra.mxu0 %v1855_v62 }
  0xd0   :  { %635 = vmatpush.msrb.mxu2 %v585_v39 }
  0xd2   :  { %636 = vmatpush.msrb.mxu2 %v584_v41 }
  0xd4   :  { %637 = vmatpush.msrb.mxu2 %v583_v42 }
  0xd6   :  { %v395_v26 = vld [vmem:[#allocation3 + $0x11] sm:$0xff]  ;;  %638 = vmatpush.msrb.mxu2 %v582_v43 }
  0xd7   :  { %v463_v27 = vld [vmem:[#allocation3 + $0x12] sm:$0xff]  ;;  %1538 = vmatmul.msk.f32.gmra.mxu3 %vm338_vm3, %v395_v26 }
  0xd8   :  { %1542 = vmatmul.msk.f32.gmra.mxu0 %vm338_vm3, %v463_v27  ;;  %v385_v29 = vld [vmem:[#allocation3 + $0x10] sm:$0xff]  ;;  %639 = vmatpush.msrb.mxu2 %v581_v44 }
  0xda   :  { %640 = vmatpush.msrb.mxu2 %v580_v45 }
  0xdc   :  { %641 = vmatpush.msrb.mxu2 %v579_v49 }
  0xde   :  { %665 = vmatpush.msra.mxu2 %v1843_v53 }
  0xdf   :  { %1539 = vmatmul.msk.f32.vlgmr.msra.gmra.mxu3 %vm338_vm3, %v384_v28 }
  0xe0   :  { %666 = vmatpush.msra.mxu2 %v1845_v54 }
  0xe2   :  { %667 = vmatpush.msra.mxu2 %v1849_v56 }
  0xe4   :  { %668 = vmatpush.msra.mxu2 %v1855_v62 }
  0xe7   :  { %1540 = vmatmul.msk.f32.gmra.mxu3 %vm338_vm3, %v385_v29 }
 0x141   :  { %v495_v50 = vpop.f32.mrf.mxu0 }
 0x146   :  { %v427_v36 = vpop.f32.mrf.mxu3 }
 0x155   :  { %v498_v5 = vpop.f32.mrf.mxu0 }
 0x15a   :  { %v430_v40 = vpop.f32.mrf.mxu3 }
 0x162   :  { %v456_v46 = vpop.f32.mrf.mxu3 }
 0x163   :  { %v457_v47 = vadd.f32 %v456_v46, %v427_v36 }
 0x165   :  { %v501_v51 = vadd.f32 %v495_v50, %v457_v47 }
 0x167   :  { %v504_v52 = vadd.f32 %v1575_v48, %v501_v51 }
 0x169   :  { %v506_v55 = vmax.f32 %v504_v52, 0.0 }
 0x16a   :  { %v459_v57 = vpop.f32.mrf.mxu3 }
 0x16b   :  { %v510_v58 = vrot.slane %v506_v55, 2  ;;  %v511_v59 = vrot.slane %v506_v55, 4  ;;  %v512_v60 = vrot.slane %v506_v55, 6  ;;  %v523_v61 = vsel %vm522_vm11, %v506_v55, -inf }
 0x16c   :  { %v524_v63 = vrot.slane %v523_v61, 4  ;;  %v460_v1 = vadd.f32 %v459_v57, %v430_v40 }
 0x16d   :  { %v530_v2 = vsel %vm522_vm11, %v510_v58, -inf  ;;  %v537_v3 = vsel %vm522_vm11, %v511_v59, -inf  ;;  %v544_v4 = vsel %vm522_vm11, %v512_v60, -inf }
 0x16e   :  { %v525_v6 = vmax.f32 %v523_v61, %v524_v63  ;;  %v531_v7 = vrot.slane %v530_v2, 4  ;;  %v538_v8 = vrot.slane %v537_v3, 4  ;;  %v545_v9 = vrot.slane %v544_v4, 4 }
 0x16f   :  { %v502_v10 = vadd.f32 %v498_v5, %v460_v1 }
 0x170   :  { %v526_v11 = vrot.slane %v525_v6, 2  ;;  %v532_v12 = vmax.f32 %v530_v2, %v531_v7  ;;  %v539_v13 = vmax.f32 %v537_v3, %v538_v8  ;;  %v546_v14 = vmax.f32 %v544_v4, %v545_v9 }
 0x171   :  { %v505_v15 = vadd.f32 %v1575_v48, %v502_v10 }
 0x172   :  { %v527_v16 = vmax.f32 %v525_v6, %v526_v11  ;;  %v533_v17 = vrot.slane %v532_v12, 2  ;;  %v540_v18 = vrot.slane %v539_v13, 2  ;;  %v547_v19 = vrot.slane %v546_v14, 2 }
 0x173   :  { %v507_v20 = vmax.f32 %v505_v15, 0.0 }
 0x174   :  { %v528_v21 = vrot.slane %v527_v16, 1  ;;  %v534_v22 = vmax.f32 %v532_v12, %v533_v17  ;;  %v541_v24 = vmax.f32 %v539_v13, %v540_v18  ;;  %v548_v33 = vmax.f32 %v546_v14, %v547_v19  ;;  %v1576_v12 = vld [vmem:[#allocation4 + $0x188] ss:$0 sm:$0xff] }
 0x175   :  { %v513_v25 = vrot.slane %v507_v20, 2  ;;  %v514_v26 = vrot.slane %v507_v20, 4  ;;  %v515_v27 = vrot.slane %v507_v20, 6  ;;  %v551_v28 = vsel %vm522_vm11, %v507_v20, -inf }
 0x176   :  { %v535_v29 = vrot.slane %v534_v22, 1  ;;  %v552_v30 = vrot.slane %v551_v28, 4  ;;  %v542_v31 = vrot.slane %v541_v24, 1  ;;  %v529_v38 = vmax.f32 %v527_v16, %v528_v21 }
 0x177   :  { %v558_v32 = vsel %vm522_vm11, %v513_v25, -inf  ;;  %v565_v34 = vsel %vm522_vm11, %v514_v26, -inf  ;;  %v572_v35 = vsel %vm522_vm11, %v515_v27, -inf  ;;  %v549_v44 = vrot.slane %v548_v33, 1 }
 0x178   :  { %v553_v36 = vmax.f32 %v551_v28, %v552_v30  ;;  %v559_v23 = vrot.slane %v558_v32, 4  ;;  %v536_v37 = vmax.f32 %v534_v22, %v535_v29  ;;  %v566_v39 = vrot.slane %v565_v34, 4 }
 0x179   :  { %v573_v40 = vrot.slane %v572_v35, 4  ;;  %v543_v42 = vmax.f32 %v541_v24, %v542_v31  ;;  %v550_v58 = vmax.f32 %v548_v33, %v549_v44 }
 0x17a   :  { %v554_v41 = vrot.slane %v553_v36, 2  ;;  %v560_v43 = vmax.f32 %v558_v32, %v559_v23  ;;  %v567_v45 = vmax.f32 %v565_v34, %v566_v39  ;;  %v618_v47 = vsel %vm359_vm4, %v536_v37, %v529_v38 }
 0x17b   :  { %v574_v46 = vmax.f32 %v572_v35, %v573_v40  ;;  %v619_v57 = vsel %vm361_vm5, %v543_v42, %v618_v47  ;;  %vm649_vm5 = vcmask 261120  }
 0x17c   :  { %v555_v48 = vmax.f32 %v553_v36, %v554_v41  ;;  %v561_v49 = vrot.slane %v560_v43, 2  ;;  %v568_v50 = vrot.slane %v567_v45, 2  ;;  %v620_v3 = vsel %vm363_vm6, %v550_v58, %v619_v57 }
 0x17d   :  { %v575_v51 = vrot.slane %v574_v46, 2 }
 0x17e   :  { %v556_v52 = vrot.slane %v555_v48, 1  ;;  %v562_v55 = vmax.f32 %v560_v43, %v561_v49  ;;  %v569_v59 = vmax.f32 %v567_v45, %v568_v50 }
 0x17f   :  { %v576_v60 = vmax.f32 %v574_v46, %v575_v51 }
 0x180   :  { %v557_v61 = vmax.f32 %v555_v48, %v556_v52  ;;  %v563_v63 = vrot.slane %v562_v55, 1  ;;  %v570_v1 = vrot.slane %v569_v59, 1 }
 0x181   :  { %v577_v2 = vrot.slane %v576_v60, 1 }
 0x182   :  { %v564_v4 = vmax.f32 %v562_v55, %v563_v63  ;;  %v621_v5 = vsel %vm365_vm7, %v557_v61, %v620_v3  ;;  %v571_v6 = vmax.f32 %v569_v59, %v570_v1  ;;  %v607_v63 = vld [vmem:[#allocation4 + $0x1c8] sm:$0xff]  ;;  %v602_v3 = vld [vmem:[#allocation4 + $0x1a0] sm:$0xff] }
 0x183   :  { %v578_v7 = vmax.f32 %v576_v60, %v577_v2  ;;  %v603_v1 = vld [vmem:[#allocation4 + $0x1a8] sm:$0xff]  ;;  %v606_v2 = vld [vmem:[#allocation4 + $0x1c0] sm:$0xff]  ;;  %1080 = vmatpush.msra.mxu1 %v607_v63  ;;  %1279 = vmatpush.msrb.mxu0 %v607_v63 }
 0x184   :  { %v622_v8 = vsel %vm367_vm8, %v564_v4, %v621_v5  ;;  %900 = vmatpush.msrb.mxu3 %v603_v1  ;;  %v605_v4 = vld [vmem:[#allocation4 + $0x1b8] sm:$0xff] }
 0x185   :  { %v623_v9 = vsel %vm369_vm9, %v571_v6, %v622_v8  ;;  %v601_v5 = vld [vmem:[#allocation4 + $0x198] sm:$0xff]  ;;  %v604_v6 = vld [vmem:[#allocation4 + $0x1b0] sm:$0xff]  ;;  %1081 = vmatpush.msra.mxu1 %v606_v2  ;;  %1280 = vmatpush.msrb.mxu0 %v606_v2 }
 0x186   :  { %v624_v10 = vsel %vm371_vm10, %v578_v7, %v623_v9  ;;  %901 = vmatpush.msrb.mxu3 %v602_v3  ;;  %v600_v7 = vld [vmem:[#allocation4 + $0x190] sm:$0xff] }
 0x187   :  { %642 = vmatmul.f32.vlgmr.msrb.gmra.mxu2 %v624_v10  ;;  %1082 = vmatpush.msra.mxu1 %v605_v4 }
 0x188   :  { %880 = vmatpush.msrb.mxu2 %v607_v63  ;;  %902 = vmatpush.msrb.mxu3 %v601_v5 }
 0x189   :  { %1281 = vmatpush.msrb.mxu0 %v605_v4  ;;  %1083 = vmatpush.msra.mxu1 %v604_v6 }
 0x18a   :  { %881 = vmatpush.msrb.mxu2 %v606_v2  ;;  %903 = vmatpush.msrb.mxu3 %v600_v7 }
 0x18b   :  { %1282 = vmatpush.msrb.mxu0 %v604_v6 }
 0x18c   :  { %882 = vmatpush.msrb.mxu2 %v605_v4  ;;  %1167 = vmatpush.msra.mxu3 %v1843_v53 }
 0x18e   :  { %883 = vmatpush.msrb.mxu2 %v604_v6  ;;  %1168 = vmatpush.msra.mxu3 %v1845_v54 }
 0x18f   :  { %669 = vmatmul.f32.vlgmr.msra.gmra.mxu2 %v1731_v0 }
 0x190   :  { %1100 = vmatpush.msra.mxu2 %v603_v1  ;;  %1169 = vmatpush.msra.mxu3 %v1849_v56 }
 0x192   :  { %1101 = vmatpush.msra.mxu2 %v602_v3  ;;  %1170 = vmatpush.msra.mxu3 %v1855_v62 }
 0x194   :  { %1102 = vmatpush.msra.mxu2 %v601_v5 }
 0x196   :  { %1103 = vmatpush.msra.mxu2 %v600_v7 }
 0x197   :  { %884 = vmatmul.f32.vlgmr.msrb.gmra.mxu2 %v1731_v0 }
 0x198   :  { %1362 = vmatpush.msrb.mxu2 %v607_v63 }
 0x19a   :  { %1363 = vmatpush.msrb.mxu2 %v606_v2 }
 0x19c   :  { %1364 = vmatpush.msrb.mxu2 %v605_v4 }
 0x19e   :  { %1365 = vmatpush.msrb.mxu2 %v604_v6 }
 0x20a   :  { %v643_v11 = vpop.f32.mrf.mxu2 }
 0x20b   :  { %v1879_v13 = vadd.f32 %v1576_v12, %v643_v11 }
 0x20d   :  { %v1883_v17 = vrot.slane %v1879_v13, 4 }
 0x212   :  { %v670_v14 = vpop.f32.mrf.mxu2 }
 0x213   :  { %v677_v15 = vadd.f32 %v670_v14, %v1879_v13  ;;  %v674_v16 = vrot.slane %v670_v14, 1 }
 0x215   :  { %1580 = vtanh.f32 %v677_v15  ;;  %v678_v18 = vadd.f32 %v674_v16, %v1883_v17  ;;  %v1543_v21 = vmul.f32 -1.442695, %v677_v15 }
 0x217   :  { %1582 = vtanh.f32 %v678_v18  ;;  %v1544_v22 = vmul.f32 -1.442695, %v678_v18  ;;  %v1914_v18 = vld [vmem:[#allocation4 + $0x1d0] ss:$0 sm:$0xff] }
 0x218   :  { %1584 = vpow2.f32 %v1543_v21 }
 0x219   :  { %1586 = vpow2.f32 %v1544_v22 }
 0x21a   :  { %v885_v16 = vpop.f32.mrf.mxu2 }
 0x21b   :  { %v1581_v19 = vpop.eup %1580 }
 0x21c   :  { %723 = vrot.lane.b32.xlu0 %v1581_v19, %s1732_s0 }
 0x21d   :  { %v1583_v20 = vpop.eup %1582 }
 0x21e   :  { %v1585_v24 = vpop.eup %1584 }
 0x21f   :  { %v685_v25 = vadd.f32 1.0, %v1585_v24  ;;  %v1587_v26 = vpop.eup %1586 }
 0x220   :  { %v686_v27 = vadd.f32 1.0, %v1587_v26 }
 0x221   :  { %1588 = vrcp.f32 %v685_v25  ;;  %v698_v36 = vand.u32 2147483648, %v685_v25  ;;  %vm692_vm13 = vweird.f32 %v685_v25  ;;  %v696_v23 = vand.u32 2147483647, %v685_v25 }
 0x222   :  { %1590 = vrcp.f32 %v686_v27  ;;  %v713_v44 = vand.u32 2147483648, %v686_v27  ;;  %vm707_vm1 = vweird.f32 %v686_v27  ;;  %v711_v45 = vand.u32 2147483647, %v686_v27 }
 0x223   :  { %v699_v39 = vor.u32 1.1754944e-38, %v698_v36  ;;  %vm697_vm15 = vcmp.eq.f32.partialorder %v696_v23, 8.507059e+37 }
 0x224   :  { %725 = vrot.lane.b32.xlu0 %v1583_v20, %s1732_s0  ;;  %v714_v47 = vor.u32 1.1754944e-38, %v713_v44  ;;  %vm712_vm3 = vcmp.eq.f32.partialorder %v711_v45, 8.507059e+37 }
 0x227   :  { %v1589_v28 = vpop.eup %1588 }
 0x228   :  { %v688_v29 = vmul.f32 %v1589_v28, %v685_v25  ;;  %v1591_v31 = vpop.eup %1590  ;;  %vm693_vm12 = vweird.f32 %v1589_v28 }
 0x229   :  { %v703_v33 = vmul.f32 %v1591_v31, %v686_v27  ;;  %vm694_vm14 = vmor %vm692_vm13, %vm693_vm12  ;;  %vm708_vm0 = vweird.f32 %v1591_v31 }
 0x22a   :  { %v689_v30 = vsub.f32 1.0, %v688_v29  ;;  %vm709_vm2 = vmor %vm707_vm1, %vm708_vm0 }
 0x22b   :  { %v704_v35 = vsub.f32 1.0, %v703_v33 }
 0x22c   :  { %v690_v32 = vmul.f32 %v1589_v28, %v689_v30 }
 0x22d   :  { %v705_v38 = vmul.f32 %v1591_v31, %v704_v35 }
 0x22e   :  { %v691_v34 = vadd.f32 %v1589_v28, %v690_v32 }
 0x22f   :  { %v706_v43 = vadd.f32 %v1591_v31, %v705_v38 }
 0x230   :  { %v695_v37 = vsel %vm694_vm14, %v1589_v28, %v691_v34 }
 0x231   :  { %v1888_v41 = vsel %vm697_vm15, %v699_v39, %v695_v37  ;;  %v710_v46 = vsel %vm709_vm2, %v1591_v31, %v706_v43 }
 0x232   :  { %v715_v49 = vsel %vm712_vm3, %v714_v47, %v710_v46  ;;  %v719_v51 = vmul.f32 0.0, %v1888_v41 }
 0x233   :  { %v720_v57 = vmul.f32 0.0, %v715_v49 }
 0x28e   :  { %v724_v40 = vpop.permute.xlu0 %723 }
 0x28f   :  { %v729_v42 = vmul.f32 %v724_v40, %v1888_v41 }
 0x291   :  { %733 = vrot.lane.b32.xlu1 %v729_v42, %s1733_s23 }
 0x296   :  { %v726_v48 = vpop.permute.xlu0 %725 }
 0x297   :  { %v730_v50 = vmul.f32 %v726_v48, %v715_v49 }
 0x299   :  { %735 = vrot.lane.b32.xlu1 %v730_v50, %s1733_s23 }
 0x303   :  { %v734_v52 = vpop.permute.xlu1 %733 }
 0x304   :  { %v1894_v55 = vadd.f32 %v734_v52, %v719_v51 }
 0x306   :  { %1592 = vtanh.f32 %v1894_v55 }
 0x30b   :  { %v736_v58 = vpop.permute.xlu1 %735 }
 0x30c   :  { %v1593_v59 = vpop.eup %1592  ;;  %v1897_v60 = vadd.f32 %v736_v58, %v720_v57 }
 0x30d   :  { %745 = vrot.lane.b32.xlu2 %v1593_v59, %s1732_s0 }
 0x30e   :  { %1594 = vtanh.f32 %v1897_v60 }
 0x314   :  { %v1595_v61 = vpop.eup %1594 }
 0x315   :  { %747 = vrot.lane.b32.xlu2 %v1595_v61, %s1732_s0 }
 0x367   :  { %v746_v8 = vpop.permute.xlu2 %745 }
 0x368   :  { %v751_v0 = vmul.f32 %v746_v8, %v1888_v41 }
 0x36a   :  { %v755_v11 = vperm.slane %v751_v0, 0 }
 0x36f   :  { %v748_v9 = vpop.permute.xlu2 %747 }
 0x370   :  { %v752_v10 = vmul.f32 %v748_v9, %v715_v49 }
 0x372   :  { %v756_v53 = vperm.slane %v752_v10, 0 }
 0x374   :  { %v757_v12 = vsel %vm359_vm4, %v756_v53, %v755_v11  ;;  %v831_v53 = vrot.slane %v1897_v60, 7 }
 0x375   :  { %758 = vrot.lane.b32.xlu0 %v757_v12, %s1733_s23 }
 0x3e7   :  { %v759_v54 = vpop.permute.xlu0 %758 }
 0x3e8   :  { %1545 = vmatmul.msk.f32.vlgmr.msrb.gmra.mxu1 %vm649_vm5, %v759_v54  ;;  %1548 = vmatmul.msk.f32.vlgmr.msrb.gmra.mxu3 %vm649_vm5, %v759_v54 }
 0x3e9   :  { %1299 = vmatpush.msrb.mxu1 %v603_v1  ;;  %1391 = vmatpush.msrb.mxu3 %v603_v1 }
 0x3eb   :  { %1300 = vmatpush.msrb.mxu1 %v602_v3  ;;  %1392 = vmatpush.msrb.mxu3 %v602_v3 }
 0x3ed   :  { %1301 = vmatpush.msrb.mxu1 %v601_v5  ;;  %1393 = vmatpush.msrb.mxu3 %v601_v5 }
 0x3ef   :  { %1302 = vmatpush.msrb.mxu1 %v600_v7  ;;  %1394 = vmatpush.msrb.mxu3 %v600_v7 }
 0x465   :  { %v779_v56 = vpop.f32.mrf.mxu1 }
 0x466   :  { %v783_v62 = vrot.slane %v779_v56, 7  ;;  %v787_v14 = vadd.f32 %v779_v56, %v1883_v17 }
 0x468   :  { %v786_v15 = vadd.f32 %v783_v62, %v1879_v13  ;;  %1596 = vtanh.f32 %v787_v14  ;;  %v1547_v26 = vmul.f32 -1.442695, %v787_v14  ;;  %v830_v14 = vrot.slane %v1894_v55, 7 }
 0x46a   :  { %1598 = vtanh.f32 %v786_v15  ;;  %v1546_v31 = vmul.f32 -1.442695, %v786_v15 }
 0x46b   :  { %v905_v19 = vpop.f32.mrf.mxu3 }
 0x46c   :  { %v906_v20 = vadd.f32 %v905_v19, %v885_v16 }
 0x46e   :  { %v1597_v21 = vpop.eup %1596  ;;  %v909_v22 = vadd.f32 %v1914_v18, %v906_v20 }
 0x46f   :  { %840 = vrot.lane.b32.xlu2 %v1597_v21, %s1732_s0 }
 0x470   :  { %1600 = vtanh.f32 %v909_v22  ;;  %v1599_v24 = vpop.eup %1598  ;;  %v1549_v33 = vmul.f32 -1.442695, %v909_v22 }
 0x471   :  { %838 = vrot.lane.b32.xlu1 %v1599_v24, %s1732_s0  ;;  %1602 = vpow2.f32 %v1547_v26 }
 0x476   :  { %v1601_v25 = vpop.eup %1600 }
 0x477   :  { %932 = vrot.lane.b32.xlu0 %v1601_v25, %s1732_s0  ;;  %v1603_v27 = vpop.eup %1602 }
 0x478   :  { %v795_v28 = vadd.f32 1.0, %v1603_v27 }
 0x47a   :  { %1604 = vrcp.f32 %v795_v28  ;;  %v822_v23 = vand.u32 2147483648, %v795_v28  ;;  %vm816_vm7 = vweird.f32 %v795_v28  ;;  %v820_v38 = vand.u32 2147483647, %v795_v28 }
 0x47b   :  { %1606 = vpow2.f32 %v1546_v31 }
 0x47c   :  { %1608 = vpow2.f32 %v1549_v33  ;;  %v823_v41 = vor.u32 1.1754944e-38, %v822_v23  ;;  %vm821_vm9 = vcmp.eq.f32.partialorder %v820_v38, 8.507059e+37 }
 0x480   :  { %v1605_v29 = vpop.eup %1604 }
 0x481   :  { %v812_v30 = vmul.f32 %v1605_v29, %v795_v28  ;;  %v1607_v35 = vpop.eup %1606  ;;  %vm817_vm6 = vweird.f32 %v1605_v29 }
 0x482   :  { %v794_v37 = vadd.f32 1.0, %v1607_v35  ;;  %vm818_vm8 = vmor %vm816_vm7, %vm817_vm6  ;;  %v1609_v39 = vpop.eup %1608 }
 0x483   :  { %v813_v32 = vsub.f32 1.0, %v812_v30  ;;  %v913_v42 = vadd.f32 1.0, %v1609_v39 }
 0x484   :  { %1610 = vrcp.f32 %v794_v37  ;;  %v807_v58 = vand.u32 2147483648, %v794_v37  ;;  %vm801_vm11 = vweird.f32 %v794_v37  ;;  %v805_v61 = vand.u32 2147483647, %v794_v37 }
 0x485   :  { %v814_v34 = vmul.f32 %v1605_v29, %v813_v32  ;;  %1612 = vrcp.f32 %v913_v42  ;;  %v925_v3 = vand.u32 2147483648, %v913_v42  ;;  %vm919_vm15 = vweird.f32 %v913_v42 }
 0x486   :  { %v808_v1 = vor.u32 1.1754944e-38, %v807_v58  ;;  %vm806_vm14 = vcmp.eq.f32.partialorder %v805_v61, 8.507059e+37  ;;  %v923_v6 = vand.u32 2147483647, %v913_v42 }
 0x487   :  { %v815_v36 = vadd.f32 %v1605_v29, %v814_v34  ;;  %v926_v0 = vor.u32 1.1754944e-38, %v925_v3 }
 0x488   :  { %vm924_vm1 = vcmp.eq.f32.partialorder %v923_v6, 8.507059e+37 }
 0x489   :  { %v819_v40 = vsel %vm818_vm8, %v1605_v29, %v815_v36 }
 0x48a   :  { %v824_v44 = vsel %vm821_vm9, %v823_v41, %v819_v40  ;;  %v1611_v46 = vpop.eup %1610 }
 0x48b   :  { %v797_v47 = vmul.f32 %v1611_v46, %v794_v37  ;;  %v1613_v48 = vpop.eup %1612  ;;  %vm802_vm10 = vweird.f32 %v1611_v46  ;;  %v835_v12 = vmul.f32 %v831_v53, %v824_v44 }
 0x48c   :  { %v915_v50 = vmul.f32 %v1613_v48, %v913_v42  ;;  %vm803_vm12 = vmor %vm801_vm11, %vm802_vm10  ;;  %vm920_vm13 = vweird.f32 %v1613_v48 }
 0x48d   :  { %v798_v49 = vsub.f32 1.0, %v797_v47  ;;  %vm921_vm0 = vmor %vm919_vm15, %vm920_vm13 }
 0x48e   :  { %v916_v52 = vsub.f32 1.0, %v915_v50 }
 0x48f   :  { %v799_v51 = vmul.f32 %v1611_v46, %v798_v49 }
 0x490   :  { %v917_v59 = vmul.f32 %v1613_v48, %v916_v52 }
 0x491   :  { %v800_v57 = vadd.f32 %v1611_v46, %v799_v51 }
 0x492   :  { %v918_v2 = vadd.f32 %v1613_v48, %v917_v59 }
 0x493   :  { %v804_v63 = vsel %vm803_vm12, %v1611_v46, %v800_v57 }
 0x494   :  { %v809_v5 = vsel %vm806_vm14, %v808_v1, %v804_v63  ;;  %v922_v8 = vsel %vm921_vm0, %v1613_v48, %v918_v2 }
 0x495   :  { %v927_v10 = vsel %vm924_vm1, %v926_v0, %v922_v8  ;;  %v834_v15 = vmul.f32 %v830_v14, %v809_v5 }
 0x496   :  { %v930_v20 = vmul.f32 0.0, %v927_v10 }
 0x4c9   :  { %v841_v43 = vpop.permute.xlu2 %840 }
 0x4ca   :  { %v845_v45 = vmul.f32 %v841_v43, %v824_v44 }
 0x4cc   :  { %850 = vrot.lane.b32.xlu2 %v845_v45, %s1733_s23 }
 0x4e3   :  { %v839_v4 = vpop.permute.xlu1 %838 }
 0x4e4   :  { %v844_v7 = vmul.f32 %v839_v4, %v809_v5 }
 0x4e6   :  { %848 = vrot.lane.b32.xlu1 %v844_v7, %s1733_s23 }
 0x4e9   :  { %v933_v9 = vpop.permute.xlu0 %932 }
 0x4ea   :  { %v935_v11 = vmul.f32 %v933_v9, %v927_v10 }
 0x4ec   :  { %937 = vrot.lane.b32.xlu0 %v935_v11, %s1733_s23 }
 0x526   :  { %v851_v54 = vpop.permute.xlu2 %850 }
 0x527   :  { %v1924_v56 = vadd.f32 %v851_v54, %v835_v12 }
 0x529   :  { %1614 = vtanh.f32 %v1924_v56 }
 0x52f   :  { %v1615_v62 = vpop.eup %1614 }
 0x530   :  { %862 = vrot.lane.b32.xlu2 %v1615_v62, %s1732_s0 }
 0x558   :  { %v849_v16 = vpop.permute.xlu1 %848 }
 0x559   :  { %v1929_v19 = vadd.f32 %v849_v16, %v834_v15 }
 0x55b   :  { %1616 = vtanh.f32 %v1929_v19 }
 0x55e   :  { %v938_v21 = vpop.permute.xlu0 %937 }
 0x55f   :  { %v1932_v60 = vadd.f32 %v938_v21, %v930_v20 }
 0x561   :  { %1618 = vtanh.f32 %v1932_v60  ;;  %v1617_v22 = vpop.eup %1616 }
 0x562   :  { %860 = vrot.lane.b32.xlu1 %v1617_v22, %s1732_s0 }
 0x567   :  { %v1619_v24 = vpop.eup %1618 }
 0x568   :  { %943 = vrot.lane.b32.xlu0 %v1619_v24, %s1732_s0 }
 0x58a   :  { %v863_v25 = vpop.permute.xlu2 %862 }
 0x58b   :  { %v867_v55 = vmul.f32 %v863_v25, %v824_v44 }
 0x58d   :  { %v950_v28 = vperm.slane %v867_v55, 1 }
 0x5d4   :  { %v861_v26 = vpop.permute.xlu1 %860 }
 0x5d5   :  { %v866_v27 = vmul.f32 %v861_v26, %v809_v5 }
 0x5d7   :  { %v949_v29 = vperm.slane %v866_v27, 1 }
 0x5d9   :  { %v951_v31 = vsel %vm359_vm4, %v950_v28, %v949_v29 }
 0x5da   :  { %v944_v30 = vpop.permute.xlu0 %943  ;;  %952 = vrot.lane.b32.xlu1 %v951_v31, %s1733_s23 }
 0x5db   :  { %v946_v32 = vmul.f32 %v944_v30, %v927_v10 }
 0x5dd   :  { %1064 = vrot.lane.b32.xlu2 %v946_v32, %s1733_s23 }
 0x637   :  { %v1065_v33 = vpop.permute.xlu2 %1064 }
 0x638   :  { %1553 = vmatmul.msk.f32.vlgmr.msra.gmra.mxu1 %vm649_vm5, %v1065_v33 }
 0x64c   :  { %v953_v34 = vpop.permute.xlu1 %952 }
 0x64d   :  { %1550 = vmatmul.msk.f32.vlgmr.msra.gmra.mxu0 %vm649_vm5, %v953_v34  ;;  %1554 = vmatmul.msk.f32.vlgmr.msra.gmra.mxu2 %vm649_vm5, %v953_v34 }
 0x6b5   :  { %v1085_v39 = vpop.f32.mrf.mxu1 }
 0x6ca   :  { %v973_v35 = vpop.f32.mrf.mxu0 }
 0x6cb   :  { %v977_v36 = vrot.slane %v973_v35, 6  ;;  %v978_v23 = vrot.slane %v973_v35, 7 }
 0x6cd   :  { %v981_v37 = vadd.f32 %v977_v36, %v1879_v13  ;;  %v982_v38 = vadd.f32 %v978_v23, %v1883_v17 }
 0x6cf   :  { %1620 = vtanh.f32 %v981_v37  ;;  %v1551_v49 = vmul.f32 -1.442695, %v981_v37  ;;  %v1552_v50 = vmul.f32 -1.442695, %v982_v38  ;;  %v1025_v37 = vrot.slane %v1929_v19, 7 }
 0x6d0   :  { %1622 = vtanh.f32 %v982_v38  ;;  %v1105_v40 = vpop.f32.mrf.mxu2  ;;  %v1026_v38 = vrot.slane %v1924_v56, 7 }
 0x6d1   :  { %v1106_v41 = vadd.f32 %v1105_v40, %v1085_v39 }
 0x6d3   :  { %v1108_v42 = vadd.f32 %v1914_v18, %v1106_v41 }
 0x6d5   :  { %v1621_v43 = vpop.eup %1620  ;;  %1624 = vtanh.f32 %v1108_v42  ;;  %v1555_v46 = vmul.f32 -1.442695, %v1108_v42 }
 0x6d6   :  { %v1623_v44 = vpop.eup %1622  ;;  %1033 = vrot.lane.b32.xlu0 %v1621_v43, %s1732_s0 }
 0x6d7   :  { %1035 = vrot.lane.b32.xlu1 %v1623_v44, %s1732_s0  ;;  %1626 = vpow2.f32 %v1555_v46 }
 0x6db   :  { %v1625_v45 = vpop.eup %1624 }
 0x6dc   :  { %1131 = vrot.lane.b32.xlu2 %v1625_v45, %s1732_s0 }
 0x6dd   :  { %v1627_v47 = vpop.eup %1626 }
 0x6de   :  { %v1112_v48 = vadd.f32 1.0, %v1627_v47 }
 0x6e0   :  { %1628 = vrcp.f32 %v1112_v48  ;;  %v1124_v3 = vand.u32 2147483648, %v1112_v48  ;;  %vm1118_vm3 = vweird.f32 %v1112_v48  ;;  %v1122_v4 = vand.u32 2147483647, %v1112_v48 }
 0x6e1   :  { %1630 = vpow2.f32 %v1551_v49 }
 0x6e2   :  { %1632 = vpow2.f32 %v1552_v50  ;;  %v1125_v8 = vor.u32 1.1754944e-38, %v1124_v3  ;;  %vm1123_vm7 = vcmp.eq.f32.partialorder %v1122_v4, 8.507059e+37 }
 0x6e6   :  { %v1629_v51 = vpop.eup %1628 }
 0x6e7   :  { %v1114_v52 = vmul.f32 %v1629_v51, %v1112_v48  ;;  %v1631_v57 = vpop.eup %1630  ;;  %vm1119_vm2 = vweird.f32 %v1629_v51 }
 0x6e8   :  { %v1633_v58 = vpop.eup %1632  ;;  %v989_v61 = vadd.f32 1.0, %v1631_v57  ;;  %vm1120_vm6 = vmor %vm1118_vm3, %vm1119_vm2 }
 0x6e9   :  { %v1115_v59 = vsub.f32 1.0, %v1114_v52  ;;  %v990_v63 = vadd.f32 1.0, %v1633_v58 }
 0x6ea   :  { %1634 = vrcp.f32 %v989_v61  ;;  %v1002_v20 = vand.u32 2147483648, %v989_v61  ;;  %vm996_vm10 = vweird.f32 %v989_v61  ;;  %v1000_v22 = vand.u32 2147483647, %v989_v61 }
 0x6eb   :  { %v1116_v1 = vmul.f32 %v1629_v51, %v1115_v59  ;;  %1636 = vrcp.f32 %v990_v63  ;;  %v1017_v21 = vand.u32 2147483648, %v990_v63  ;;  %vm1011_vm11 = vweird.f32 %v990_v63 }
 0x6ec   :  { %v1015_v24 = vand.u32 2147483647, %v990_v63  ;;  %v1003_v26 = vor.u32 1.1754944e-38, %v1002_v20  ;;  %vm1001_vm14 = vcmp.eq.f32.partialorder %v1000_v22, 8.507059e+37 }
 0x6ed   :  { %v1117_v2 = vadd.f32 %v1629_v51, %v1116_v1  ;;  %v1018_v27 = vor.u32 1.1754944e-38, %v1017_v21 }
 0x6ee   :  { %vm1016_vm15 = vcmp.eq.f32.partialorder %v1015_v24, 8.507059e+37 }
 0x6ef   :  { %v1121_v7 = vsel %vm1120_vm6, %v1629_v51, %v1117_v2 }
 0x6f0   :  { %v1635_v5 = vpop.eup %1634  ;;  %v1126_v10 = vsel %vm1123_vm7, %v1125_v8, %v1121_v7 }
 0x6f1   :  { %v1637_v6 = vpop.eup %1636  ;;  %v992_v0 = vmul.f32 %v1635_v5, %v989_v61  ;;  %vm997_vm8 = vweird.f32 %v1635_v5  ;;  %v1129_v34 = vmul.f32 %v1126_v10, %v1932_v60 }
 0x6f2   :  { %v1007_v11 = vmul.f32 %v1637_v6, %v990_v63  ;;  %vm1012_vm9 = vweird.f32 %v1637_v6  ;;  %vm998_vm12 = vmor %vm996_vm10, %vm997_vm8 }
 0x6f3   :  { %v993_v12 = vsub.f32 1.0, %v992_v0  ;;  %vm1013_vm13 = vmor %vm1011_vm11, %vm1012_vm9 }
 0x6f4   :  { %v1008_v54 = vsub.f32 1.0, %v1007_v11 }
 0x6f5   :  { %v994_v62 = vmul.f32 %v1635_v5, %v993_v12 }
 0x6f6   :  { %v1009_v14 = vmul.f32 %v1637_v6, %v1008_v54 }
 0x6f7   :  { %v995_v15 = vadd.f32 %v1635_v5, %v994_v62 }
 0x6f8   :  { %v1010_v16 = vadd.f32 %v1637_v6, %v1009_v14 }
 0x6f9   :  { %v999_v25 = vsel %vm998_vm12, %v1635_v5, %v995_v15 }
 0x6fa   :  { %v1014_v55 = vsel %vm1013_vm13, %v1637_v6, %v1010_v16  ;;  %v1004_v29 = vsel %vm1001_vm14, %v1003_v26, %v999_v25 }
 0x6fb   :  { %v1019_v31 = vsel %vm1016_vm15, %v1018_v27, %v1014_v55  ;;  %v1029_v39 = vmul.f32 %v1025_v37, %v1004_v29 }
 0x6fc   :  { %v1030_v40 = vmul.f32 %v1026_v38, %v1019_v31 }
 0x736   :  { %v1132_v9 = vpop.permute.xlu2 %1131 }
 0x737   :  { %v1134_v53 = vmul.f32 %v1132_v9, %v1126_v10 }
 0x739   :  { %1136 = vrot.lane.b32.xlu2 %v1134_v53, %s1733_s23 }
 0x748   :  { %v1034_v28 = vpop.permute.xlu0 %1033 }
 0x749   :  { %v1036_v30 = vpop.permute.xlu1 %1035  ;;  %v1039_v32 = vmul.f32 %v1034_v28, %v1004_v29 }
 0x74a   :  { %v1040_v33 = vmul.f32 %v1036_v30, %v1019_v31 }
 0x74b   :  { %1043 = vrot.lane.b32.xlu0 %v1039_v32, %s1733_s23 }
 0x74c   :  { %1045 = vrot.lane.b32.xlu1 %v1040_v33, %s1733_s23 }
 0x793   :  { %v1137_v35 = vpop.permute.xlu2 %1136 }
 0x794   :  { %v1953_v36 = vadd.f32 %v1137_v35, %v1129_v34 }
 0x796   :  { %1638 = vtanh.f32 %v1953_v36 }
 0x79c   :  { %v1639_v23 = vpop.eup %1638 }
 0x79d   :  { %1142 = vrot.lane.b32.xlu2 %v1639_v23, %s1732_s0 }
 0x7bd   :  { %v1044_v41 = vpop.permute.xlu0 %1043 }
 0x7be   :  { %v1046_v42 = vpop.permute.xlu1 %1045  ;;  %v1959_v43 = vadd.f32 %v1044_v41, %v1029_v39 }
 0x7bf   :  { %v1961_v44 = vadd.f32 %v1046_v42, %v1030_v40 }
 0x7c0   :  { %1640 = vtanh.f32 %v1959_v43 }
 0x7c1   :  { %1642 = vtanh.f32 %v1961_v44 }
 0x7c6   :  { %v1641_v60 = vpop.eup %1640 }
 0x7c7   :  { %v1643_v45 = vpop.eup %1642  ;;  %1055 = vrot.lane.b32.xlu0 %v1641_v60, %s1732_s0 }
 0x7c8   :  { %1057 = vrot.lane.b32.xlu1 %v1643_v45, %s1732_s0 }
 0x7f7   :  { %v1143_v19 = vpop.permute.xlu2 %1142 }
 0x7f8   :  { %v1145_v56 = vmul.f32 %v1143_v19, %v1126_v10 }
 0x7fa   :  { %1263 = vrot.lane.b32.xlu1 %v1145_v56, %s1733_s23 }
 0x839   :  { %v1056_v46 = vpop.permute.xlu0 %1055 }
 0x83a   :  { %v1058_v47 = vpop.permute.xlu1 %1057  ;;  %v1061_v48 = vmul.f32 %v1056_v46, %v1004_v29 }
 0x83b   :  { %v1062_v49 = vmul.f32 %v1058_v47, %v1019_v31 }
 0x83c   :  { %v1148_v50 = vperm.slane %v1061_v48, 2 }
 0x83d   :  { %v1149_v51 = vperm.slane %v1062_v49, 2 }
 0x83f   :  { %v1150_v52 = vsel %vm359_vm4, %v1149_v51, %v1148_v50 }
 0x840   :  { %1151 = vrot.lane.b32.xlu0 %v1150_v52, %s1733_s23  ;;  %v1224_v52 = vrot.slane %v1959_v43, 7 }
 0x86c   :  { %v1264_v57 = vpop.permute.xlu1 %1263 }
 0x86d   :  { %1559 = vmatmul.msk.f32.vlgmr.msrb.gmra.mxu0 %vm649_vm5, %v1264_v57 }
 0x8b2   :  { %v1152_v58 = vpop.permute.xlu0 %1151 }
 0x8b3   :  { %1556 = vmatmul.msk.f32.vlgmr.msra.gmra.mxu3 %vm649_vm5, %v1152_v58  ;;  %1560 = vmatmul.msk.f32.vlgmr.msrb.gmra.mxu1 %vm649_vm5, %v1152_v58 }
 0x8ea   :  { %v1284_v59 = vpop.f32.mrf.mxu0 }
 0x930   :  { %v1304_v61 = vpop.f32.mrf.mxu1 }
 0x931   :  { %v1305_v63 = vadd.f32 %v1304_v61, %v1284_v59 }
 0x933   :  { %v1307_v1 = vadd.f32 %v1914_v18, %v1305_v63 }
 0x935   :  { %1644 = vtanh.f32 %v1307_v1  ;;  %v1561_v53 = vmul.f32 -1.442695, %v1307_v1 }
 0x936   :  { %v1172_v2 = vpop.f32.mrf.mxu3 }
 0x937   :  { %v1176_v3 = vrot.slane %v1172_v2, 5  ;;  %v1177_v4 = vrot.slane %v1172_v2, 6 }
 0x939   :  { %v1180_v5 = vadd.f32 %v1176_v3, %v1879_v13  ;;  %v1181_v6 = vadd.f32 %v1177_v4, %v1883_v17  ;;  %v1225_v3 = vrot.slane %v1961_v44, 7 }
 0x93b   :  { %v1645_v7 = vpop.eup %1644  ;;  %1646 = vtanh.f32 %v1180_v5  ;;  %v1557_v9 = vmul.f32 -1.442695, %v1180_v5  ;;  %v1558_v17 = vmul.f32 -1.442695, %v1181_v6 }
 0x93c   :  { %1648 = vtanh.f32 %v1181_v6  ;;  %1330 = vrot.lane.b32.xlu1 %v1645_v7, %s1732_s0 }
 0x93d   :  { %1650 = vpow2.f32 %v1557_v9 }
 0x941   :  { %v1647_v8 = vpop.eup %1646 }
 0x942   :  { %v1649_v0 = vpop.eup %1648  ;;  %1232 = vrot.lane.b32.xlu2 %v1647_v8, %s1732_s0 }
 0x943   :  { %1234 = vrot.lane.b32.xlu0 %v1649_v0, %s1732_s0  ;;  %v1651_v10 = vpop.eup %1650 }
 0x944   :  { %v1188_v11 = vadd.f32 1.0, %v1651_v10 }
 0x946   :  { %1652 = vrcp.f32 %v1188_v11  ;;  %v1201_v22 = vand.u32 2147483648, %v1188_v11  ;;  %vm1195_vm1 = vweird.f32 %v1188_v11  ;;  %v1199_v24 = vand.u32 2147483647, %v1188_v11 }
 0x947   :  { %1654 = vpow2.f32 %v1561_v53 }
 0x948   :  { %1656 = vpow2.f32 %v1558_v17  ;;  %v1202_v26 = vor.u32 1.1754944e-38, %v1201_v22  ;;  %vm1200_vm3 = vcmp.eq.f32.partialorder %v1199_v24, 8.507059e+37 }
 0x94c   :  { %v1653_v13 = vpop.eup %1652 }
 0x94d   :  { %v1191_v12 = vmul.f32 %v1653_v13, %v1188_v11  ;;  %v1655_v54 = vpop.eup %1654  ;;  %vm1196_vm0 = vweird.f32 %v1653_v13 }
 0x94e   :  { %v1311_v14 = vadd.f32 1.0, %v1655_v54  ;;  %v1657_v16 = vpop.eup %1656  ;;  %vm1197_vm2 = vmor %vm1195_vm1, %vm1196_vm0 }
 0x94f   :  { %v1192_v62 = vsub.f32 1.0, %v1191_v12  ;;  %v1189_v20 = vadd.f32 1.0, %v1657_v16 }
 0x950   :  { %1658 = vrcp.f32 %v1311_v14  ;;  %v1323_v37 = vand.u32 2147483648, %v1311_v14  ;;  %vm1317_vm7 = vweird.f32 %v1311_v14  ;;  %v1321_v38 = vand.u32 2147483647, %v1311_v14 }
 0x951   :  { %v1193_v15 = vmul.f32 %v1653_v13, %v1192_v62  ;;  %1660 = vrcp.f32 %v1189_v20  ;;  %v1216_v56 = vand.u32 2147483648, %v1189_v20  ;;  %vm1210_vm11 = vweird.f32 %v1189_v20 }
 0x952   :  { %v1324_v41 = vor.u32 1.1754944e-38, %v1323_v37  ;;  %vm1322_vm9 = vcmp.eq.f32.partialorder %v1321_v38, 8.507059e+37  ;;  %v1214_v46 = vand.u32 2147483647, %v1189_v20  ;;  %v1440_v38 = vld [vmem:[#allocation4 + $0x1f0] sm:$0xff] }
 0x953   :  { %v1194_v21 = vadd.f32 %v1653_v13, %v1193_v15  ;;  %v1217_v48 = vor.u32 1.1754944e-38, %v1216_v56  ;;  %1460 = vmatpush.msra.mxu0 %v1440_v38  ;;  %v1482_v56 = vld [vmem:[#allocation4 + $0x268] sm:$0xff] }
 0x954   :  { %vm1215_vm13 = vcmp.eq.f32.partialorder %v1214_v46, 8.507059e+37  ;;  %v1481_v46 = vld [vmem:[#allocation4 + $0x260] sm:$0xff] }
 0x955   :  { %v1198_v55 = vsel %vm1197_vm2, %v1653_v13, %v1194_v21 }
 0x956   :  { %v1659_v25 = vpop.eup %1658  ;;  %v1203_v29 = vsel %vm1200_vm3, %v1202_v26, %v1198_v55 }
 0x957   :  { %v1313_v27 = vmul.f32 %v1659_v25, %v1311_v14  ;;  %v1661_v31 = vpop.eup %1660  ;;  %vm1318_vm6 = vweird.f32 %v1659_v25  ;;  %v1228_v57 = vmul.f32 %v1224_v52, %v1203_v29  ;;  %v1475_v52 = vld [vmem:[#allocation4 + $0x230] sm:$0xff] }
 0x958   :  { %v1206_v33 = vmul.f32 %v1661_v31, %v1189_v20  ;;  %vm1319_vm8 = vmor %vm1317_vm7, %vm1318_vm6  ;;  %vm1211_vm10 = vweird.f32 %v1661_v31 }
 0x959   :  { %v1314_v32 = vsub.f32 1.0, %v1313_v27  ;;  %vm1212_vm12 = vmor %vm1210_vm11, %vm1211_vm10 }
 0x95a   :  { %v1207_v35 = vsub.f32 1.0, %v1206_v33 }
 0x95b   :  { %v1315_v34 = vmul.f32 %v1659_v25, %v1314_v32 }
 0x95c   :  { %v1208_v39 = vmul.f32 %v1661_v31, %v1207_v35 }
 0x95d   :  { %v1316_v23 = vadd.f32 %v1659_v25, %v1315_v34 }
 0x95e   :  { %v1209_v45 = vadd.f32 %v1661_v31, %v1208_v39  ;;  %v1439_v39 = vld [vmem:[#allocation4 + $0x1e8] sm:$0xff] }
 0x95f   :  { %v1320_v40 = vsel %vm1319_vm8, %v1659_v25, %v1316_v23  ;;  %1461 = vmatpush.msra.mxu0 %v1439_v39 }
 0x960   :  { %v1325_v60 = vsel %vm1322_vm9, %v1324_v41, %v1320_v40  ;;  %v1213_v47 = vsel %vm1212_vm12, %v1661_v31, %v1209_v45  ;;  %v1438_v40 = vld [vmem:[#allocation4 + $0x1e0] sm:$0xff]  ;;  %v1437_v41 = vld [vmem:[#allocation4 + $0x1d8] sm:$0xff] }
 0x961   :  { %v1218_v50 = vsel %vm1215_vm13, %v1217_v48, %v1213_v47  ;;  %v1328_v63 = vmul.f32 %v1325_v60, %v1953_v36  ;;  %1462 = vmatpush.msra.mxu0 %v1438_v40  ;;  %v1484_v45 = vld [vmem:[#allocation4 + $0x278] sm:$0xff]  ;;  %v1479_v48 = vld [vmem:[#allocation4 + $0x250] sm:$0xff] }
 0x962   :  { %v1229_v4 = vmul.f32 %v1225_v3, %v1218_v50  ;;  %1487 = vmatpush.msra.mxu1 %v1484_v45  ;;  %v1480_v47 = vld [vmem:[#allocation4 + $0x258] sm:$0xff] }
 0x963   :  { %1463 = vmatpush.msra.mxu0 %v1437_v41  ;;  %v1578_v3 = vld [vmem:[#allocation4 + $0x1f8] ss:$0 sm:$0xff] }
 0x99c   :  { %v1233_v28 = vpop.permute.xlu2 %1232 }
 0x99d   :  { %v1238_v30 = vmul.f32 %v1233_v28, %v1203_v29 }
 0x99f   :  { %1242 = vrot.lane.b32.xlu2 %v1238_v30, %s1733_s23 }
 0x9ae   :  { %v1331_v42 = vpop.permute.xlu1 %1330 }
 0x9af   :  { %v1333_v19 = vmul.f32 %v1331_v42, %v1325_v60 }
 0x9b1   :  { %1335 = vrot.lane.b32.xlu1 %v1333_v19, %s1733_s23  ;;  %v1483_v19 = vld [vmem:[#allocation4 + $0x270] sm:$0xff] }
 0x9b2   :  { %1488 = vmatpush.msra.mxu1 %v1483_v19 }
 0x9b4   :  { %1489 = vmatpush.msra.mxu1 %v1482_v56 }
 0x9b5   :  { %v1235_v49 = vpop.permute.xlu0 %1234 }
 0x9b6   :  { %v1239_v51 = vmul.f32 %v1235_v49, %v1218_v50  ;;  %1490 = vmatpush.msra.mxu1 %v1481_v46  ;;  %v1478_v49 = vld [vmem:[#allocation4 + $0x248] sm:$0xff] }
 0x9b8   :  { %1244 = vrot.lane.b32.xlu0 %v1239_v51, %s1733_s23  ;;  %1491 = vmatpush.msra.mxu1 %v1480_v47  ;;  %v1476_v51 = vld [vmem:[#allocation4 + $0x238] sm:$0xff] }
 0x9ba   :  { %1492 = vmatpush.msra.mxu1 %v1479_v48 }
 0x9bc   :  { %1493 = vmatpush.msra.mxu1 %v1478_v49 }
 0x9f9   :  { %v1243_v58 = vpop.permute.xlu2 %1242 }
 0x9fa   :  { %v1248_v59 = vadd.f32 %v1243_v58, %v1228_v57  ;;  %v1474_v57 = vld [vmem:[#allocation4 + $0x228] sm:$0xff]  ;;  %v1473_v58 = vld [vmem:[#allocation4 + $0x220] sm:$0xff] }
 0x9fc   :  { %1662 = vtanh.f32 %v1248_v59  ;;  %v1472_v59 = vld [vmem:[#allocation4 + $0x218] sm:$0xff] }
 0xa02   :  { %v1663_v61 = vpop.eup %1662 }
 0xa03   :  { %1254 = vrot.lane.b32.xlu2 %v1663_v61, %s1732_s0 }
 0xa23   :  { %v1336_v1 = vpop.permute.xlu1 %1335 }
 0xa24   :  { %v1338_v2 = vadd.f32 %v1336_v1, %v1328_v63  ;;  %v1471_v63 = vld [vmem:[#allocation4 + $0x210] sm:$0xff]  ;;  %v1470_v1 = vld [vmem:[#allocation4 + $0x208] sm:$0xff] }
 0xa26   :  { %1664 = vtanh.f32 %v1338_v2 }
 0xa2a   :  { %v1245_v5 = vpop.permute.xlu0 %1244 }
 0xa2b   :  { %v1249_v6 = vadd.f32 %v1245_v5, %v1229_v4 }
 0xa2c   :  { %v1665_v7 = vpop.eup %1664 }
 0xa2d   :  { %1666 = vtanh.f32 %v1249_v6  ;;  %1341 = vrot.lane.b32.xlu1 %v1665_v7, %s1732_s0  ;;  %v1579_v7 = vld [vmem:[#allocation4 + $0x280] ss:$0 sm:$0xff] }
 0xa33   :  { %v1667_v43 = vpop.eup %1666 }
 0xa34   :  { %1256 = vrot.lane.b32.xlu0 %v1667_v43, %s1732_s0 }
 0xa5d   :  { %v1255_v9 = vpop.permute.xlu2 %1254 }
 0xa5e   :  { %v1260_v36 = vmul.f32 %v1255_v9, %v1203_v29 }
 0xa60   :  { %v1372_v53 = vperm.slane %v1260_v36, 3 }
 0xa9f   :  { %v1342_v8 = vpop.permute.xlu1 %1341 }
 0xaa0   :  { %v1344_v0 = vmul.f32 %v1342_v8, %v1325_v60 }
 0xaa2   :  { %1346 = vrot.lane.b32.xlu2 %v1344_v0, %s1733_s23 }
 0xaa6   :  { %v1257_v10 = vpop.permute.xlu0 %1256 }
 0xaa7   :  { %v1261_v11 = vmul.f32 %v1257_v10, %v1218_v50  ;;  %v1477_v50 = vld [vmem:[#allocation4 + $0x240] sm:$0xff] }
 0xaa8   :  { %1494 = vmatpush.msra.mxu1 %v1477_v50 }
 0xaa9   :  { %v1373_v44 = vperm.slane %v1261_v11, 3 }
 0xaaa   :  { %1495 = vmatpush.msra.mxu1 %v1476_v51 }
 0xaab   :  { %v1374_v13 = vsel %vm359_vm4, %v1373_v44, %v1372_v53 }
 0xaac   :  { %1375 = vrot.lane.b32.xlu0 %v1374_v13, %s1733_s23  ;;  %1496 = vmatpush.msra.mxu1 %v1475_v52 }
 0xaae   :  { %1497 = vmatpush.msra.mxu1 %v1474_v57 }
 0xab0   :  { %1498 = vmatpush.msra.mxu1 %v1473_v58 }
 0xab2   :  { %1499 = vmatpush.msra.mxu1 %v1472_v59 }
 0xab4   :  { %1500 = vmatpush.msra.mxu1 %v1471_v63 }
 0xab6   :  { %1501 = vmatpush.msra.mxu1 %v1470_v1 }
 0xafc   :  { %v1347_v17 = vpop.permute.xlu2 %1346 }
 0xafd   :  { %1562 = vmatmul.msk.f32.vlgmr.msrb.gmra.mxu2 %vm649_vm5, %v1347_v17 }
 0xb1e   :  { %v1376_v12 = vpop.permute.xlu0 %1375 }
 0xb1f   :  { %1563 = vmatmul.msk.f32.vlgmr.msrb.gmra.mxu3 %vm649_vm5, %v1376_v12 }
 0xb80   :  { %v1367_v54 = vpop.f32.mrf.mxu2 }
 0xba2   :  { %v1396_v62 = vpop.f32.mrf.mxu3 }
 0xba3   :  { %v1397_v14 = vadd.f32 %v1396_v62, %v1367_v54 }
 0xba5   :  { %v1399_v15 = vadd.f32 %v1914_v18, %v1397_v14 }
 0xba7   :  { %1668 = vtanh.f32 %v1399_v15  ;;  %v1564_v20 = vmul.f32 -1.442695, %v1399_v15 }
 0xba9   :  { %1670 = vpow2.f32 %v1564_v20 }
 0xbad   :  { %v1669_v16 = vpop.eup %1668 }
 0xbae   :  { %1422 = vrot.lane.b32.xlu1 %v1669_v16, %s1732_s0 }
 0xbaf   :  { %v1671_v21 = vpop.eup %1670 }
 0xbb0   :  { %v1403_v22 = vadd.f32 1.0, %v1671_v21 }
 0xbb2   :  { %1672 = vrcp.f32 %v1403_v22  ;;  %v1415_v28 = vand.u32 2147483648, %v1403_v22  ;;  %vm1409_vm14 = vweird.f32 %v1403_v22  ;;  %v1413_v29 = vand.u32 2147483647, %v1403_v22 }
 0xbb4   :  { %v1416_v30 = vor.u32 1.1754944e-38, %v1415_v28  ;;  %vm1414_vm0 = vcmp.eq.f32.partialorder %v1413_v29, 8.507059e+37 }
 0xbb8   :  { %v1673_v24 = vpop.eup %1672 }
 0xbb9   :  { %v1405_v25 = vmul.f32 %v1673_v24, %v1403_v22  ;;  %vm1410_vm4 = vweird.f32 %v1673_v24 }
 0xbba   :  { %vm1411_vm15 = vmor %vm1409_vm14, %vm1410_vm4 }
 0xbbb   :  { %v1406_v55 = vsub.f32 1.0, %v1405_v25 }
 0xbbd   :  { %v1407_v26 = vmul.f32 %v1673_v24, %v1406_v55 }
 0xbbf   :  { %v1408_v27 = vadd.f32 %v1673_v24, %v1407_v26 }
 0xbc1   :  { %v1412_v18 = vsel %vm1411_vm15, %v1673_v24, %v1408_v27 }
 0xbc2   :  { %v1417_v32 = vsel %vm1414_vm0, %v1416_v30, %v1412_v18 }
 0xbc3   :  { %v1420_v34 = vmul.f32 %v1417_v32, %v1338_v2  ;;  %v1469_v2 = vld [vmem:[#allocation4 + $0x200] sm:$0xff] }
 0xbc4   :  { %1502 = vmatpush.msra.mxu1 %v1469_v2 }
 0xc20   :  { %v1423_v31 = vpop.permute.xlu1 %1422 }
 0xc21   :  { %v1425_v33 = vmul.f32 %v1423_v31, %v1417_v32 }
 0xc23   :  { %1427 = vrot.lane.b32.xlu2 %v1425_v33, %s1733_s23 }
 0xc7d   :  { %v1428_v35 = vpop.permute.xlu2 %1427 }
 0xc7e   :  { %v1430_v23 = vadd.f32 %v1428_v35, %v1420_v34 }
 0xc80   :  { %1674 = vtanh.f32 %v1430_v23 }
 0xc86   :  { %v1675_v37 = vpop.eup %1674 }
 0xc87   :  { %1433 = vrot.lane.b32.xlu0 %v1675_v37, %s1732_s0 }
 0xcf9   :  { %v1434_v42 = vpop.permute.xlu0 %1433 }
 0xcfa   :  { %v1436_v60 = vmul.f32 %v1434_v42, %v1417_v32 }
 0xcfc   :  { %1444 = vrot.lane.b32.xlu1 %v1436_v60, %s1733_s23 }
 0xd6e   :  { %v1445_v61 = vpop.permute.xlu1 %1444 }
 0xd6f   :  { %1565 = vmatmul.msk.f32.vlgmr.msra.gmra.mxu0 %vm649_vm5, %v1445_v61 }
 0xdec   :  { %v1465_v4 = vpop.f32.mrf.mxu0 }
 0xded   :  { %v1466_v5 = vadd.f32 %v1578_v3, %v1465_v4 }
 0xdef   :  { %v1468_v6 = vmax.f32 %v1466_v5, 0.0 }
 0xdf1   :  { %1503 = vmatmul.f32.vlgmr.msra.gmra.mxu1 %v1468_v6 }
 0xe6e   :  { %v1504_v43 = vpop.f32.mrf.mxu1 }
 0xe6f   :  { %v1505_v8 = vadd.f32 %v1579_v7, %v1504_v43 }
 0xe71   :  { %1507 = vst [vmem:[#allocation7] sm:$0x3] %v1505_v8 }
 0xe72   :  { %1518 = dma.vmem_to_hbm [thread:$0]  %s1514_s25, 32, %s1516_s28, [#allocation6]  }
 0xe73   :  { %1726 = dma.done.wait [#allocation6], 32  }
 0xe74   :  { %1727 = vsyncadd [#allocation6], 4294967264 }
 0xe75   :  { %1523 = vsyncpa [#allocation5], 1 }
 0xe76   :  { %1524 = vsyncpa [#allocation6], 1 }

</bundles_post_ra>
